<compile_context>
chip_gen: v5e
topology: v5e:2x2
jax: 0.10.0
libtpu: 0.0.40
codegen_flags: <defaults>
</compile_context>

<pallas_src>
import jax
import jax.numpy as jnp
import numpy as np
from jax.experimental import pallas as pl
from jax.experimental.pallas import tpu as pltpu


def _round_up(x, m):
    return ((x + m - 1) // m) * m


# Gate blocks are packed in the order (i, f, o, g); source layout is PyTorch's
# (i, f, g, o).  This puts the three sigmoid gates in contiguous lane blocks.
_GATE_SRC_ORDER = (0, 1, 3, 2)


def decoder_lstm_kernel(x_ref,      # (T*Bp, WVp)  embedded tokens, time-major rows
                        wih_ref,    # (WVp, 4*Hp)  W_ih^T, gate-blocked (i,f,o,g)
                        whh_ref,    # (Hp, 4*Hp)   W_hh^T, gate-blocked (i,f,o,g)
                        b_ref,      # (1, 4*Hp)    b_ih + b_hh, gate-blocked
                        h0_ref,     # (Bp, Hp)     initial hidden == initial cell
                        wlin_ref,   # (Hp, Vp)     W_linear^T
                        blin_ref,   # (1, Vp)      b_linear
                        out_ref,    # (T*Bp, Vp)   logits for every timestep
                        xg_sc, hs_sc):
    Bp = h0_ref.shape[0]
    Hp = h0_ref.shape[1]
    T = xg_sc.shape[0] // Bp          # static Python int

    # (1) Input projection for the whole sequence: one big MXU matmul, hoisted
    #     out of the recurrence (bias folded in here too).
    xg_sc[...] = (
        jnp.dot(x_ref[...], wih_ref[...], preferred_element_type=jnp.float32)
        + b_ref[...]
    )

    # (2) Sequential recurrence.  h/c live in the loop carry (vregs) — no VMEM
    #     round-trip per step; only h @ W_hh^T + gate math + one row store.
    def step(t, carry):
        h, c = carry
        r = pl.multiple_of(t * Bp, Bp)
        gates = xg_sc[pl.ds(r, Bp), :] + jnp.dot(
            h, whh_ref[...], preferred_element_type=jnp.float32)

        # One wide sigmoid (i, f, o blocks) + one tanh (g block).
        sig = jax.nn.sigmoid(gates[:, 0:3 * Hp])
        i_g = sig[:, 0 * Hp:1 * Hp]
        f_g = sig[:, 1 * Hp:2 * Hp]
        o_g = sig[:, 2 * Hp:3 * Hp]
        g_g = jnp.tanh(gates[:, 3 * Hp:4 * Hp])

        c_new = f_g * c + i_g * g_g
        h_new = o_g * jnp.tanh(c_new)
        hs_sc[pl.ds(r, Bp), :] = h_new
        return (h_new, c_new)

    # Decoder initial state: rnn(x, (h, h)) -> both hidden and cell start at h.
    h0 = h0_ref[...]
    jax.lax.fori_loop(0, T, step, (h0, h0), unroll=min(T, 8))

    # (3) Output Linear for the whole sequence: one MXU matmul, lane-dense store.
    out_ref[...] = (
        jnp.dot(hs_sc[...], wlin_ref[...], preferred_element_type=jnp.float32)
        + blin_ref[...]
    ).astype(out_ref.dtype)


def _pack_gate_weights_t(w, in_dim_pad, H, H_pad):
    """w: (4H, in_dim) PyTorch (i,f,g,o) layout -> (in_dim_pad, 4*H_pad)
    transposed, gate blocks reordered to (i,f,o,g), each gate's H columns
    placed at [dst*H_pad : dst*H_pad+H]."""
    in_dim = w.shape[1]
    out = jnp.zeros((in_dim_pad, 4 * H_pad), jnp.float32)
    wt = w.T
    for dst, src in enumerate(_GATE_SRC_ORDER):
        out = out.at[:in_dim, dst * H_pad:dst * H_pad + H].set(
            wt[:, src * H:(src + 1) * H])
    return out


def _pack_gate_bias(b, H, H_pad):
    out = jnp.zeros((1, 4 * H_pad), jnp.float32)
    for dst, src in enumerate(_GATE_SRC_ORDER):
        out = out.at[0, dst * H_pad:dst * H_pad + H].set(
            b[src * H:(src + 1) * H])
    return out


def decoder_forward(tokens, h0, embed_w, w_ih, w_hh, b_ih, b_hh, w_lin, b_lin):
    """tokens: (B, T) int32, h0: (B, H) f32. Returns (B, T, vocab) f32."""
    B, T = tokens.shape
    V, WV = embed_w.shape
    H = w_hh.shape[1]

    Bp = _round_up(max(B, 8), 8)          # sublane alignment
    WVp = _round_up(WV, 128)              # lane alignment (contraction dim)
    Hp = _round_up(H, 128)                # lane alignment (e.g. 100 -> 128)
    Vp = _round_up(V, 128)                # lane-dense output store

    # Embedding lookup (gather) stays in plain JAX.
    # TODO(synk): embedding gather has no clean tiled-BlockSpec equivalent;
    # done in the wrapper and fed to the kernel as dense activations.
    x_emb = jnp.take(embed_w, tokens, axis=0).astype(jnp.float32)   # (B, T, WV)
    x_tbf = jnp.transpose(x_emb, (1, 0, 2))                         # (T, B, WV)
    x_pad = jnp.zeros((T, Bp, WVp), jnp.float32).at[:, :B, :WV].set(x_tbf)
    x_flat = x_pad.reshape(T * Bp, WVp)                             # time-major rows

    wih_p = _pack_gate_weights_t(w_ih, WVp, H, Hp)     # (WVp, 4Hp)
    whh_p = _pack_gate_weights_t(w_hh, Hp, H, Hp)      # (Hp, 4Hp)
    b_p = _pack_gate_bias(b_ih + b_hh, H, Hp)          # (1, 4Hp)

    h0_p = jnp.zeros((Bp, Hp), jnp.float32).at[:B, :H].set(h0)

    wlin_p = jnp.zeros((Hp, Vp), jnp.float32).at[:H, :V].set(w_lin.T)
    blin_p = jnp.zeros((1, Vp), jnp.float32).at[0, :V].set(b_lin)

    # Actual resident VMEM footprint (inputs + output + scratch), f32.
    elems = (T * Bp * WVp            # x_flat
             + WVp * 4 * Hp          # wih
             + Hp * 4 * Hp           # whh
             + 4 * Hp                # bias
             + Bp * Hp               # h0
             + Hp * Vp               # wlin
             + Vp                    # blin
             + T * Bp * Vp           # out
             + T * Bp * 4 * Hp       # xg_sc
             + T * Bp * Hp)          # hs_sc
    footprint = 4 * elems
    vmem_limit = int(min(max(2 * footprint, 2 * 1024 * 1024),
                         48 * 1024 * 1024))

    out_p = pl.pallas_call(
        decoder_lstm_kernel,
        out_shape=jax.ShapeDtypeStruct((T * Bp, Vp), jnp.float32),
        # Single invocation (no grid): every operand is copied to VMEM exactly
        # once — no per-step DMAs, no double-buffered weights.
        in_specs=[pl.BlockSpec(memory_space=pltpu.MemorySpace.VMEM)] * 7,
        out_specs=pl.BlockSpec(memory_space=pltpu.MemorySpace.VMEM),
        scratch_shapes=[
            pltpu.VMEM((T * Bp, 4 * Hp), jnp.float32),   # precomputed input gates
            pltpu.VMEM((T * Bp, Hp), jnp.float32),       # hidden states, all steps
        ],
        compiler_params=pltpu.CompilerParams(
            vmem_limit_bytes=vmem_limit),
    )(x_flat, wih_p, whh_p, b_p, h0_p, wlin_p, blin_p)

    out = out_p.reshape(T, Bp, Vp)
    out = jnp.transpose(out, (1, 0, 2))[:B, :, :V]       # (B, T, V)
    return out


def reference_forward(tokens, h0, embed_w, w_ih, w_hh, b_ih, b_hh, w_lin, b_lin):
    """Pure-JAX reference matching the PyTorch Decoder semantics."""
    H = w_hh.shape[1]
    x = jnp.take(embed_w, tokens, axis=0)                # (B, T, WV)

    def step(carry, x_t):
        h, c = carry
        gates = x_t @ w_ih.T + h @ w_hh.T + b_ih + b_hh
        i = jax.nn.sigmoid(gates[:, 0 * H:1 * H])
        f = jax.nn.sigmoid(gates[:, 1 * H:2 * H])
        g = jnp.tanh(gates[:, 2 * H:3 * H])
        o = jax.nn.sigmoid(gates[:, 3 * H:4 * H])
        c = f * c + i * g
        h = o * jnp.tanh(c)
        return (h, c), h

    (_, _), hs = jax.lax.scan(step, (h0, h0), jnp.transpose(x, (1, 0, 2)))
    hs = jnp.transpose(hs, (1, 0, 2))                    # (B, T, H)
    return hs @ w_lin.T + b_lin                          # (B, T, V)


if __name__ == "__main__":
    # Small shapes consistent with the module's forward.
    VOCAB = 50        # ncc.vocab_size (synthetic)
    WV = 16           # wv_size
    H = 32            # hidden_size (scaled down from 100 for a small example)
    B, T = 2, 8

    key = jax.random.PRNGKey(0)
    (k_emb, k_ih, k_hh, k_bih, k_bhh,
     k_lw, k_lb, k_tok, k_h) = jax.random.split(key, 9)

    # nn.Embedding: weight ~ N(0, 1), then /= 100
    embed_w = jax.random.normal(k_emb, (VOCAB, WV), jnp.float32) / 100.0

    # nn.LSTM params ~ U(-1/sqrt(H), 1/sqrt(H)); PyTorch gate order i,f,g,o
    bound = 1.0 / np.sqrt(H)
    w_ih = jax.random.uniform(k_ih, (4 * H, WV), jnp.float32, -bound, bound)
    w_hh = jax.random.uniform(k_hh, (4 * H, H), jnp.float32, -bound, bound)
    b_ih = jax.random.uniform(k_bih, (4 * H,), jnp.float32, -bound, bound)
    b_hh = jax.random.uniform(k_bhh, (4 * H,), jnp.float32, -bound, bound)

    # nn.Linear(hidden_size, vocab_size): U(-1/sqrt(H), 1/sqrt(H))
    w_lin = jax.random.uniform(k_lw, (VOCAB, H), jnp.float32, -bound, bound)
    b_lin = jax.random.uniform(k_lb, (VOCAB,), jnp.float32, -bound, bound)

    tokens = jax.random.randint(k_tok, (B, T), 0, VOCAB, dtype=jnp.int32)
    # Encoder-produced hidden state (LSTM hidden stays in (-1, 1)).
    h0 = jnp.tanh(jax.random.normal(k_h, (B, H), jnp.float32))

    out = decoder_forward(tokens, h0, embed_w, w_ih, w_hh, b_ih, b_hh,
                          w_lin, b_lin)
    out = jax.block_until_ready(out)

    ref = jax.block_until_ready(
        reference_forward(tokens, h0, embed_w, w_ih, w_hh, b_ih, b_hh,
                          w_lin, b_lin))

    assert out.shape == (B, T, VOCAB), out.shape
    np.testing.assert_allclose(np.asarray(out), np.asarray(ref),
                               atol=1e-3, rtol=1e-3)
    print("KERNEL_OK")
</pallas_src>

<mosaic_0001>
module attributes {stable_mosaic.version = 11 : i64} {
  func.func @decoder_lstm_kernel(%arg0: memref<64x128xf32, #tpu.memory_space<vmem>>, %arg1: memref<128x512xf32, #tpu.memory_space<vmem>>, %arg2: memref<128x512xf32, #tpu.memory_space<vmem>>, %arg3: memref<1x512xf32, #tpu.memory_space<vmem>>, %arg4: memref<8x128xf32, #tpu.memory_space<vmem>>, %arg5: memref<128x128xf32, #tpu.memory_space<vmem>>, %arg6: memref<1x128xf32, #tpu.memory_space<vmem>>, %arg7: memref<64x128xf32, #tpu.memory_space<vmem>>, %arg8: memref<64x512xf32, #tpu.memory_space<vmem>>, %arg9: memref<64x128xf32, #tpu.memory_space<vmem>>) attributes {dimension_semantics = [], scalar_prefetch = 0 : i64, scratch_operands = 2 : i64, tpu.core_type = #tpu.core_type<tc>} {
    %c0 = arith.constant 0 : index
    %c0_0 = arith.constant 0 : index
    %0 = vector.load %arg0[%c0, %c0_0] : memref<64x128xf32, #tpu.memory_space<vmem>>, vector<64x128xf32>
    %c0_1 = arith.constant 0 : index
    %c0_2 = arith.constant 0 : index
    %1 = vector.load %arg1[%c0_1, %c0_2] : memref<128x512xf32, #tpu.memory_space<vmem>>, vector<128x512xf32>
    %cst = arith.constant dense<0.000000e+00> : vector<64x512xf32>
    %2 = tpu.matmul %0, %1, %cst {dimension_numbers = #tpu.dot_dimension_numbers<[1], [0], [0], [1], [0, 0, 1, 1], [], []>} : vector<64x128xf32>, vector<128x512xf32>, vector<64x512xf32> -> vector<64x512xf32>
    %c0_3 = arith.constant 0 : index
    %c0_4 = arith.constant 0 : index
    %3 = vector.load %arg3[%c0_3, %c0_4] : memref<1x512xf32, #tpu.memory_space<vmem>>, vector<1x512xf32>
    %4 = vector.broadcast %3 : vector<1x512xf32> to vector<64x512xf32>
    %5 = arith.addf %2, %4 : vector<64x512xf32>
    %c0_5 = arith.constant 0 : index
    %c0_6 = arith.constant 0 : index
    %6 = vector.load %arg8[%c0_5, %c0_6] : memref<64x512xf32, #tpu.memory_space<vmem>>, vector<64x512xf32>
    tpu.vector_store %arg8[%c0_5, %c0_6], %5 {strides = array<i32>} : memref<64x512xf32, #tpu.memory_space<vmem>>, vector<64x512xf32>,
    %c0_7 = arith.constant 0 : index
    %c0_8 = arith.constant 0 : index
    %7 = vector.load %arg4[%c0_7, %c0_8] : memref<8x128xf32, #tpu.memory_space<vmem>>, vector<8x128xf32>
    %c0_i32 = arith.constant 0 : i32
    %c8_i32 = arith.constant 8 : i32
    %8 = arith.muli %c0_i32, %c8_i32 : i32
    %9 = tpu.assume_multiple %8, 8 : i32
    %10 = arith.index_cast %9 : i32 to index
    %c0_9 = arith.constant 0 : index
    %11 = vector.load %arg8[%10, %c0_9] : memref<64x512xf32, #tpu.memory_space<vmem>>, vector<8x512xf32>
    %c0_10 = arith.constant 0 : index
    %c0_11 = arith.constant 0 : index
    %12 = vector.load %arg2[%c0_10, %c0_11] : memref<128x512xf32, #tpu.memory_space<vmem>>, vector<128x512xf32>
    %cst_12 = arith.constant dense<0.000000e+00> : vector<8x512xf32>
    %13 = tpu.matmul %7, %12, %cst_12 {dimension_numbers = #tpu.dot_dimension_numbers<[1], [0], [0], [1], [0, 0, 1, 1], [], []>} : vector<8x128xf32>, vector<128x512xf32>, vector<8x512xf32> -> vector<8x512xf32>
    %14 = arith.addf %11, %13 : vector<8x512xf32>
    %15 = vector.extract_strided_slice %14 {offsets = [0, 0], sizes = [8, 384], strides = [1, 1]} : vector<8x512xf32> to vector<8x384xf32>
    %16 = arith.negf %15 : vector<8x384xf32>
    %17 = math.exp %16 : vector<8x384xf32>
    %cst_13 = arith.constant 1.000000e+00 : f32
    %18 = vector.broadcast %cst_13 : f32 to vector<8x384xf32>
    %19 = arith.addf %18, %17 : vector<8x384xf32>
    %20 = arith.divf %18, %19 : vector<8x384xf32>
    %21 = vector.extract_strided_slice %20 {offsets = [0, 0], sizes = [8, 128], strides = [1, 1]} : vector<8x384xf32> to vector<8x128xf32>
    %22 = vector.extract_strided_slice %20 {offsets = [0, 128], sizes = [8, 128], strides = [1, 1]} : vector<8x384xf32> to vector<8x128xf32>
    %23 = vector.extract_strided_slice %20 {offsets = [0, 256], sizes = [8, 128], strides = [1, 1]} : vector<8x384xf32> to vector<8x128xf32>
    %24 = vector.extract_strided_slice %14 {offsets = [0, 384], sizes = [8, 128], strides = [1, 1]} : vector<8x512xf32> to vector<8x128xf32>
    %25 = math.tanh %24 : vector<8x128xf32>
    %26 = arith.mulf %22, %7 : vector<8x128xf32>
    %27 = arith.mulf %21, %25 : vector<8x128xf32>
    %28 = arith.addf %26, %27 : vector<8x128xf32>
    %29 = math.tanh %28 : vector<8x128xf32>
    %30 = arith.mulf %23, %29 : vector<8x128xf32>
    %31 = arith.index_cast %9 : i32 to index
    %c0_14 = arith.constant 0 : index
    %32 = vector.load %arg9[%31, %c0_14] : memref<64x128xf32, #tpu.memory_space<vmem>>, vector<8x128xf32>
    tpu.vector_store %arg9[%31, %c0_14], %30 {strides = array<i32>} : memref<64x128xf32, #tpu.memory_space<vmem>>, vector<8x128xf32>,
    %c1_i32 = arith.constant 1 : i32
    %c8_i32_15 = arith.constant 8 : i32
    %33 = arith.muli %c1_i32, %c8_i32_15 : i32
    %34 = tpu.assume_multiple %33, 8 : i32
    %35 = arith.index_cast %34 : i32 to index
    %c0_16 = arith.constant 0 : index
    %36 = vector.load %arg8[%35, %c0_16] : memref<64x512xf32, #tpu.memory_space<vmem>>, vector<8x512xf32>
    %c0_17 = arith.constant 0 : index
    %c0_18 = arith.constant 0 : index
    %37 = vector.load %arg2[%c0_17, %c0_18] : memref<128x512xf32, #tpu.memory_space<vmem>>, vector<128x512xf32>
    %cst_19 = arith.constant dense<0.000000e+00> : vector<8x512xf32>
    %38 = tpu.matmul %30, %37, %cst_19 {dimension_numbers = #tpu.dot_dimension_numbers<[1], [0], [0], [1], [0, 0, 1, 1], [], []>} : vector<8x128xf32>, vector<128x512xf32>, vector<8x512xf32> -> vector<8x512xf32>
    %39 = arith.addf %36, %38 : vector<8x512xf32>
    %40 = vector.extract_strided_slice %39 {offsets = [0, 0], sizes = [8, 384], strides = [1, 1]} : vector<8x512xf32> to vector<8x384xf32>
    %41 = arith.negf %40 : vector<8x384xf32>
    %42 = math.exp %41 : vector<8x384xf32>
    %cst_20 = arith.constant 1.000000e+00 : f32
    %43 = vector.broadcast %cst_20 : f32 to vector<8x384xf32>
    %44 = arith.addf %43, %42 : vector<8x384xf32>
    %45 = arith.divf %43, %44 : vector<8x384xf32>
    %46 = vector.extract_strided_slice %45 {offsets = [0, 0], sizes = [8, 128], strides = [1, 1]} : vector<8x384xf32> to vector<8x128xf32>
    %47 = vector.extract_strided_slice %45 {offsets = [0, 128], sizes = [8, 128], strides = [1, 1]} : vector<8x384xf32> to vector<8x128xf32>
    %48 = vector.extract_strided_slice %45 {offsets = [0, 256], sizes = [8, 128], strides = [1, 1]} : vector<8x384xf32> to vector<8x128xf32>
    %49 = vector.extract_strided_slice %39 {offsets = [0, 384], sizes = [8, 128], strides = [1, 1]} : vector<8x512xf32> to vector<8x128xf32>
    %50 = math.tanh %49 : vector<8x128xf32>
    %51 = arith.mulf %47, %28 : vector<8x128xf32>
    %52 = arith.mulf %46, %50 : vector<8x128xf32>
    %53 = arith.addf %51, %52 : vector<8x128xf32>
    %54 = math.tanh %53 : vector<8x128xf32>
    %55 = arith.mulf %48, %54 : vector<8x128xf32>
    %56 = arith.index_cast %34 : i32 to index
    %c0_21 = arith.constant 0 : index
    %57 = vector.load %arg9[%56, %c0_21] : memref<64x128xf32, #tpu.memory_space<vmem>>, vector<8x128xf32>
    tpu.vector_store %arg9[%56, %c0_21], %55 {strides = array<i32>} : memref<64x128xf32, #tpu.memory_space<vmem>>, vector<8x128xf32>,
    %c2_i32 = arith.constant 2 : i32
    %c8_i32_22 = arith.constant 8 : i32
    %58 = arith.muli %c2_i32, %c8_i32_22 : i32
    %59 = tpu.assume_multiple %58, 8 : i32
    %60 = arith.index_cast %59 : i32 to index
    %c0_23 = arith.constant 0 : index
    %61 = vector.load %arg8[%60, %c0_23] : memref<64x512xf32, #tpu.memory_space<vmem>>, vector<8x512xf32>
    %c0_24 = arith.constant 0 : index
    %c0_25 = arith.constant 0 : index
    %62 = vector.load %arg2[%c0_24, %c0_25] : memref<128x512xf32, #tpu.memory_space<vmem>>, vector<128x512xf32>
    %cst_26 = arith.constant dense<0.000000e+00> : vector<8x512xf32>
    %63 = tpu.matmul %55, %62, %cst_26 {dimension_numbers = #tpu.dot_dimension_numbers<[1], [0], [0], [1], [0, 0, 1, 1], [], []>} : vector<8x128xf32>, vector<128x512xf32>, vector<8x512xf32> -> vector<8x512xf32>
    %64 = arith.addf %61, %63 : vector<8x512xf32>
    %65 = vector.extract_strided_slice %64 {offsets = [0, 0], sizes = [8, 384], strides = [1, 1]} : vector<8x512xf32> to vector<8x384xf32>
    %66 = arith.negf %65 : vector<8x384xf32>
    %67 = math.exp %66 : vector<8x384xf32>
    %cst_27 = arith.constant 1.000000e+00 : f32
    %68 = vector.broadcast %cst_27 : f32 to vector<8x384xf32>
    %69 = arith.addf %68, %67 : vector<8x384xf32>
    %70 = arith.divf %68, %69 : vector<8x384xf32>
    %71 = vector.extract_strided_slice %70 {offsets = [0, 0], sizes = [8, 128], strides = [1, 1]} : vector<8x384xf32> to vector<8x128xf32>
    %72 = vector.extract_strided_slice %70 {offsets = [0, 128], sizes = [8, 128], strides = [1, 1]} : vector<8x384xf32> to vector<8x128xf32>
    %73 = vector.extract_strided_slice %70 {offsets = [0, 256], sizes = [8, 128], strides = [1, 1]} : vector<8x384xf32> to vector<8x128xf32>
    %74 = vector.extract_strided_slice %64 {offsets = [0, 384], sizes = [8, 128], strides = [1, 1]} : vector<8x512xf32> to vector<8x128xf32>
    %75 = math.tanh %74 : vector<8x128xf32>
    %76 = arith.mulf %72, %53 : vector<8x128xf32>
    %77 = arith.mulf %71, %75 : vector<8x128xf32>
    %78 = arith.addf %76, %77 : vector<8x128xf32>
    %79 = math.tanh %78 : vector<8x128xf32>
    %80 = arith.mulf %73, %79 : vector<8x128xf32>
    %81 = arith.index_cast %59 : i32 to index
    %c0_28 = arith.constant 0 : index
    %82 = vector.load %arg9[%81, %c0_28] : memref<64x128xf32, #tpu.memory_space<vmem>>, vector<8x128xf32>
    tpu.vector_store %arg9[%81, %c0_28], %80 {strides = array<i32>} : memref<64x128xf32, #tpu.memory_space<vmem>>, vector<8x128xf32>,
    %c3_i32 = arith.constant 3 : i32
    %c8_i32_29 = arith.constant 8 : i32
    %83 = arith.muli %c3_i32, %c8_i32_29 : i32
    %84 = tpu.assume_multiple %83, 8 : i32
    %85 = arith.index_cast %84 : i32 to index
    %c0_30 = arith.constant 0 : index
    %86 = vector.load %arg8[%85, %c0_30] : memref<64x512xf32, #tpu.memory_space<vmem>>, vector<8x512xf32>
    %c0_31 = arith.constant 0 : index
    %c0_32 = arith.constant 0 : index
    %87 = vector.load %arg2[%c0_31, %c0_32] : memref<128x512xf32, #tpu.memory_space<vmem>>, vector<128x512xf32>
    %cst_33 = arith.constant dense<0.000000e+00> : vector<8x512xf32>
    %88 = tpu.matmul %80, %87, %cst_33 {dimension_numbers = #tpu.dot_dimension_numbers<[1], [0], [0], [1], [0, 0, 1, 1], [], []>} : vector<8x128xf32>, vector<128x512xf32>, vector<8x512xf32> -> vector<8x512xf32>
    %89 = arith.addf %86, %88 : vector<8x512xf32>
    %90 = vector.extract_strided_slice %89 {offsets = [0, 0], sizes = [8, 384], strides = [1, 1]} : vector<8x512xf32> to vector<8x384xf32>
    %91 = arith.negf %90 : vector<8x384xf32>
    %92 = math.exp %91 : vector<8x384xf32>
    %cst_34 = arith.constant 1.000000e+00 : f32
    %93 = vector.broadcast %cst_34 : f32 to vector<8x384xf32>
    %94 = arith.addf %93, %92 : vector<8x384xf32>
    %95 = arith.divf %93, %94 : vector<8x384xf32>
    %96 = vector.extract_strided_slice %95 {offsets = [0, 0], sizes = [8, 128], strides = [1, 1]} : vector<8x384xf32> to vector<8x128xf32>
    %97 = vector.extract_strided_slice %95 {offsets = [0, 128], sizes = [8, 128], strides = [1, 1]} : vector<8x384xf32> to vector<8x128xf32>
    %98 = vector.extract_strided_slice %95 {offsets = [0, 256], sizes = [8, 128], strides = [1, 1]} : vector<8x384xf32> to vector<8x128xf32>
    %99 = vector.extract_strided_slice %89 {offsets = [0, 384], sizes = [8, 128], strides = [1, 1]} : vector<8x512xf32> to vector<8x128xf32>
    %100 = math.tanh %99 : vector<8x128xf32>
    %101 = arith.mulf %97, %78 : vector<8x128xf32>
    %102 = arith.mulf %96, %100 : vector<8x128xf32>
    %103 = arith.addf %101, %102 : vector<8x128xf32>
    %104 = math.tanh %103 : vector<8x128xf32>
    %105 = arith.mulf %98, %104 : vector<8x128xf32>
    %106 = arith.index_cast %84 : i32 to index
    %c0_35 = arith.constant 0 : index
    %107 = vector.load %arg9[%106, %c0_35] : memref<64x128xf32, #tpu.memory_space<vmem>>, vector<8x128xf32>
    tpu.vector_store %arg9[%106, %c0_35], %105 {strides = array<i32>} : memref<64x128xf32, #tpu.memory_space<vmem>>, vector<8x128xf32>,
    %c4_i32 = arith.constant 4 : i32
    %c8_i32_36 = arith.constant 8 : i32
    %108 = arith.muli %c4_i32, %c8_i32_36 : i32
    %109 = tpu.assume_multiple %108, 8 : i32
    %110 = arith.index_cast %109 : i32 to index
    %c0_37 = arith.constant 0 : index
    %111 = vector.load %arg8[%110, %c0_37] : memref<64x512xf32, #tpu.memory_space<vmem>>, vector<8x512xf32>
    %c0_38 = arith.constant 0 : index
    %c0_39 = arith.constant 0 : index
    %112 = vector.load %arg2[%c0_38, %c0_39] : memref<128x512xf32, #tpu.memory_space<vmem>>, vector<128x512xf32>
    %cst_40 = arith.constant dense<0.000000e+00> : vector<8x512xf32>
    %113 = tpu.matmul %105, %112, %cst_40 {dimension_numbers = #tpu.dot_dimension_numbers<[1], [0], [0], [1], [0, 0, 1, 1], [], []>} : vector<8x128xf32>, vector<128x512xf32>, vector<8x512xf32> -> vector<8x512xf32>
    %114 = arith.addf %111, %113 : vector<8x512xf32>
    %115 = vector.extract_strided_slice %114 {offsets = [0, 0], sizes = [8, 384], strides = [1, 1]} : vector<8x512xf32> to vector<8x384xf32>
    %116 = arith.negf %115 : vector<8x384xf32>
    %117 = math.exp %116 : vector<8x384xf32>
    %cst_41 = arith.constant 1.000000e+00 : f32
    %118 = vector.broadcast %cst_41 : f32 to vector<8x384xf32>
    %119 = arith.addf %118, %117 : vector<8x384xf32>
    %120 = arith.divf %118, %119 : vector<8x384xf32>
    %121 = vector.extract_strided_slice %120 {offsets = [0, 0], sizes = [8, 128], strides = [1, 1]} : vector<8x384xf32> to vector<8x128xf32>
    %122 = vector.extract_strided_slice %120 {offsets = [0, 128], sizes = [8, 128], strides = [1, 1]} : vector<8x384xf32> to vector<8x128xf32>
    %123 = vector.extract_strided_slice %120 {offsets = [0, 256], sizes = [8, 128], strides = [1, 1]} : vector<8x384xf32> to vector<8x128xf32>
    %124 = vector.extract_strided_slice %114 {offsets = [0, 384], sizes = [8, 128], strides = [1, 1]} : vector<8x512xf32> to vector<8x128xf32>
    %125 = math.tanh %124 : vector<8x128xf32>
    %126 = arith.mulf %122, %103 : vector<8x128xf32>
    %127 = arith.mulf %121, %125 : vector<8x128xf32>
    %128 = arith.addf %126, %127 : vector<8x128xf32>
    %129 = math.tanh %128 : vector<8x128xf32>
    %130 = arith.mulf %123, %129 : vector<8x128xf32>
    %131 = arith.index_cast %109 : i32 to index
    %c0_42 = arith.constant 0 : index
    %132 = vector.load %arg9[%131, %c0_42] : memref<64x128xf32, #tpu.memory_space<vmem>>, vector<8x128xf32>
    tpu.vector_store %arg9[%131, %c0_42], %130 {strides = array<i32>} : memref<64x128xf32, #tpu.memory_space<vmem>>, vector<8x128xf32>,
    %c5_i32 = arith.constant 5 : i32
    %c8_i32_43 = arith.constant 8 : i32
    %133 = arith.muli %c5_i32, %c8_i32_43 : i32
    %134 = tpu.assume_multiple %133, 8 : i32
    %135 = arith.index_cast %134 : i32 to index
    %c0_44 = arith.constant 0 : index
    %136 = vector.load %arg8[%135, %c0_44] : memref<64x512xf32, #tpu.memory_space<vmem>>, vector<8x512xf32>
    %c0_45 = arith.constant 0 : index
    %c0_46 = arith.constant 0 : index
    %137 = vector.load %arg2[%c0_45, %c0_46] : memref<128x512xf32, #tpu.memory_space<vmem>>, vector<128x512xf32>
    %cst_47 = arith.constant dense<0.000000e+00> : vector<8x512xf32>
    %138 = tpu.matmul %130, %137, %cst_47 {dimension_numbers = #tpu.dot_dimension_numbers<[1], [0], [0], [1], [0, 0, 1, 1], [], []>} : vector<8x128xf32>, vector<128x512xf32>, vector<8x512xf32> -> vector<8x512xf32>
    %139 = arith.addf %136, %138 : vector<8x512xf32>
    %140 = vector.extract_strided_slice %139 {offsets = [0, 0], sizes = [8, 384], strides = [1, 1]} : vector<8x512xf32> to vector<8x384xf32>
    %141 = arith.negf %140 : vector<8x384xf32>
    %142 = math.exp %141 : vector<8x384xf32>
    %cst_48 = arith.constant 1.000000e+00 : f32
    %143 = vector.broadcast %cst_48 : f32 to vector<8x384xf32>
    %144 = arith.addf %143, %142 : vector<8x384xf32>
    %145 = arith.divf %143, %144 : vector<8x384xf32>
    %146 = vector.extract_strided_slice %145 {offsets = [0, 0], sizes = [8, 128], strides = [1, 1]} : vector<8x384xf32> to vector<8x128xf32>
    %147 = vector.extract_strided_slice %145 {offsets = [0, 128], sizes = [8, 128], strides = [1, 1]} : vector<8x384xf32> to vector<8x128xf32>
    %148 = vector.extract_strided_slice %145 {offsets = [0, 256], sizes = [8, 128], strides = [1, 1]} : vector<8x384xf32> to vector<8x128xf32>
    %149 = vector.extract_strided_slice %139 {offsets = [0, 384], sizes = [8, 128], strides = [1, 1]} : vector<8x512xf32> to vector<8x128xf32>
    %150 = math.tanh %149 : vector<8x128xf32>
    %151 = arith.mulf %147, %128 : vector<8x128xf32>
    %152 = arith.mulf %146, %150 : vector<8x128xf32>
    %153 = arith.addf %151, %152 : vector<8x128xf32>
    %154 = math.tanh %153 : vector<8x128xf32>
    %155 = arith.mulf %148, %154 : vector<8x128xf32>
    %156 = arith.index_cast %134 : i32 to index
    %c0_49 = arith.constant 0 : index
    %157 = vector.load %arg9[%156, %c0_49] : memref<64x128xf32, #tpu.memory_space<vmem>>, vector<8x128xf32>
    tpu.vector_store %arg9[%156, %c0_49], %155 {strides = array<i32>} : memref<64x128xf32, #tpu.memory_space<vmem>>, vector<8x128xf32>,
    %c6_i32 = arith.constant 6 : i32
    %c8_i32_50 = arith.constant 8 : i32
    %158 = arith.muli %c6_i32, %c8_i32_50 : i32
    %159 = tpu.assume_multiple %158, 8 : i32
    %160 = arith.index_cast %159 : i32 to index
    %c0_51 = arith.constant 0 : index
    %161 = vector.load %arg8[%160, %c0_51] : memref<64x512xf32, #tpu.memory_space<vmem>>, vector<8x512xf32>
    %c0_52 = arith.constant 0 : index
    %c0_53 = arith.constant 0 : index
    %162 = vector.load %arg2[%c0_52, %c0_53] : memref<128x512xf32, #tpu.memory_space<vmem>>, vector<128x512xf32>
    %cst_54 = arith.constant dense<0.000000e+00> : vector<8x512xf32>
    %163 = tpu.matmul %155, %162, %cst_54 {dimension_numbers = #tpu.dot_dimension_numbers<[1], [0], [0], [1], [0, 0, 1, 1], [], []>} : vector<8x128xf32>, vector<128x512xf32>, vector<8x512xf32> -> vector<8x512xf32>
    %164 = arith.addf %161, %163 : vector<8x512xf32>
    %165 = vector.extract_strided_slice %164 {offsets = [0, 0], sizes = [8, 384], strides = [1, 1]} : vector<8x512xf32> to vector<8x384xf32>
    %166 = arith.negf %165 : vector<8x384xf32>
    %167 = math.exp %166 : vector<8x384xf32>
    %cst_55 = arith.constant 1.000000e+00 : f32
    %168 = vector.broadcast %cst_55 : f32 to vector<8x384xf32>
    %169 = arith.addf %168, %167 : vector<8x384xf32>
    %170 = arith.divf %168, %169 : vector<8x384xf32>
    %171 = vector.extract_strided_slice %170 {offsets = [0, 0], sizes = [8, 128], strides = [1, 1]} : vector<8x384xf32> to vector<8x128xf32>
    %172 = vector.extract_strided_slice %170 {offsets = [0, 128], sizes = [8, 128], strides = [1, 1]} : vector<8x384xf32> to vector<8x128xf32>
    %173 = vector.extract_strided_slice %170 {offsets = [0, 256], sizes = [8, 128], strides = [1, 1]} : vector<8x384xf32> to vector<8x128xf32>
    %174 = vector.extract_strided_slice %164 {offsets = [0, 384], sizes = [8, 128], strides = [1, 1]} : vector<8x512xf32> to vector<8x128xf32>
    %175 = math.tanh %174 : vector<8x128xf32>
    %176 = arith.mulf %172, %153 : vector<8x128xf32>
    %177 = arith.mulf %171, %175 : vector<8x128xf32>
    %178 = arith.addf %176, %177 : vector<8x128xf32>
    %179 = math.tanh %178 : vector<8x128xf32>
    %180 = arith.mulf %173, %179 : vector<8x128xf32>
    %181 = arith.index_cast %159 : i32 to index
    %c0_56 = arith.constant 0 : index
    %182 = vector.load %arg9[%181, %c0_56] : memref<64x128xf32, #tpu.memory_space<vmem>>, vector<8x128xf32>
    tpu.vector_store %arg9[%181, %c0_56], %180 {strides = array<i32>} : memref<64x128xf32, #tpu.memory_space<vmem>>, vector<8x128xf32>,
    %c7_i32 = arith.constant 7 : i32
    %c8_i32_57 = arith.constant 8 : i32
    %183 = arith.muli %c7_i32, %c8_i32_57 : i32
    %184 = tpu.assume_multiple %183, 8 : i32
    %185 = arith.index_cast %184 : i32 to index
    %c0_58 = arith.constant 0 : index
    %186 = vector.load %arg8[%185, %c0_58] : memref<64x512xf32, #tpu.memory_space<vmem>>, vector<8x512xf32>
    %c0_59 = arith.constant 0 : index
    %c0_60 = arith.constant 0 : index
    %187 = vector.load %arg2[%c0_59, %c0_60] : memref<128x512xf32, #tpu.memory_space<vmem>>, vector<128x512xf32>
    %cst_61 = arith.constant dense<0.000000e+00> : vector<8x512xf32>
    %188 = tpu.matmul %180, %187, %cst_61 {dimension_numbers = #tpu.dot_dimension_numbers<[1], [0], [0], [1], [0, 0, 1, 1], [], []>} : vector<8x128xf32>, vector<128x512xf32>, vector<8x512xf32> -> vector<8x512xf32>
    %189 = arith.addf %186, %188 : vector<8x512xf32>
    %190 = vector.extract_strided_slice %189 {offsets = [0, 0], sizes = [8, 384], strides = [1, 1]} : vector<8x512xf32> to vector<8x384xf32>
    %191 = arith.negf %190 : vector<8x384xf32>
    %192 = math.exp %191 : vector<8x384xf32>
    %cst_62 = arith.constant 1.000000e+00 : f32
    %193 = vector.broadcast %cst_62 : f32 to vector<8x384xf32>
    %194 = arith.addf %193, %192 : vector<8x384xf32>
    %195 = arith.divf %193, %194 : vector<8x384xf32>
    %196 = vector.extract_strided_slice %195 {offsets = [0, 0], sizes = [8, 128], strides = [1, 1]} : vector<8x384xf32> to vector<8x128xf32>
    %197 = vector.extract_strided_slice %195 {offsets = [0, 128], sizes = [8, 128], strides = [1, 1]} : vector<8x384xf32> to vector<8x128xf32>
    %198 = vector.extract_strided_slice %195 {offsets = [0, 256], sizes = [8, 128], strides = [1, 1]} : vector<8x384xf32> to vector<8x128xf32>
    %199 = vector.extract_strided_slice %189 {offsets = [0, 384], sizes = [8, 128], strides = [1, 1]} : vector<8x512xf32> to vector<8x128xf32>
    %200 = math.tanh %199 : vector<8x128xf32>
    %201 = arith.mulf %197, %178 : vector<8x128xf32>
    %202 = arith.mulf %196, %200 : vector<8x128xf32>
    %203 = arith.addf %201, %202 : vector<8x128xf32>
    %204 = math.tanh %203 : vector<8x128xf32>
    %205 = arith.mulf %198, %204 : vector<8x128xf32>
    %206 = arith.index_cast %184 : i32 to index
    %c0_63 = arith.constant 0 : index
    %207 = vector.load %arg9[%206, %c0_63] : memref<64x128xf32, #tpu.memory_space<vmem>>, vector<8x128xf32>
    tpu.vector_store %arg9[%206, %c0_63], %205 {strides = array<i32>} : memref<64x128xf32, #tpu.memory_space<vmem>>, vector<8x128xf32>,
    %c8_i32_64 = arith.constant 8 : i32
    %c0_65 = arith.constant 0 : index
    %c0_66 = arith.constant 0 : index
    %208 = vector.load %arg9[%c0_65, %c0_66] : memref<64x128xf32, #tpu.memory_space<vmem>>, vector<64x128xf32>
    %c0_67 = arith.constant 0 : index
    %c0_68 = arith.constant 0 : index
    %209 = vector.load %arg5[%c0_67, %c0_68] : memref<128x128xf32, #tpu.memory_space<vmem>>, vector<128x128xf32>
    %cst_69 = arith.constant dense<0.000000e+00> : vector<64x128xf32>
    %210 = tpu.matmul %208, %209, %cst_69 {dimension_numbers = #tpu.dot_dimension_numbers<[1], [0], [0], [1], [0, 0, 1, 1], [], []>} : vector<64x128xf32>, vector<128x128xf32>, vector<64x128xf32> -> vector<64x128xf32>
    %c0_70 = arith.constant 0 : index
    %c0_71 = arith.constant 0 : index
    %211 = vector.load %arg6[%c0_70, %c0_71] : memref<1x128xf32, #tpu.memory_space<vmem>>, vector<1x128xf32>
    %212 = vector.broadcast %211 : vector<1x128xf32> to vector<64x128xf32>
    %213 = arith.addf %210, %212 : vector<64x128xf32>
    %c0_72 = arith.constant 0 : index
    %c0_73 = arith.constant 0 : index
    %214 = vector.load %arg7[%c0_72, %c0_73] : memref<64x128xf32, #tpu.memory_space<vmem>>, vector<64x128xf32>
    tpu.vector_store %arg7[%c0_72, %c0_73], %213 {strides = array<i32>} : memref<64x128xf32, #tpu.memory_space<vmem>>, vector<64x128xf32>,
    return
  }
}

</mosaic_0001>

<bundles_post_ra>
// kernel: tpu_custom_call.1
= control target key start
LH: loop header
LB: loop body
LE: loop exit
PB: predicated region body
PF: predicated region fallthrough
CT: control target
= control target key end

     0   :  { %12 = vsyncpa [#allocation5], 0  ;;  %s3875_s0 = inlined_call_operand.hbm [shape: f32[64,128], index: 0, kind: input, shape index: {}]   ;;  %s3876_s1 = inlined_call_operand.hbm [shape: f32[128,512], index: 1, kind: input, shape index: {}]   ;;  %s3877_s2 = inlined_call_operand.hbm [shape: f32[128,512], index: 2, kind: input, shape index: {}]   ;;  %s3878_s3 = inlined_call_operand.hbm [shape: f32[1,512], index: 3, kind: input, shape index: {}]   ;;  %s3879_s4 = inlined_call_operand.hbm [shape: f32[8,128], index: 4, kind: input, shape index: {}]   ;;  %s3880_s5 = inlined_call_operand.hbm [shape: f32[128,128], index: 5, kind: input, shape index: {}]   ;;  %s3881_s6 = inlined_call_operand.vmem [shape: f32[1,128], index: 6, kind: input, shape index: {}]   ;;  %s3882_s7 = inlined_call_operand.hbm [shape: f32[64,128], index: 7, kind: output, shape index: {}]  }
   0x1   :  { %13 = vsyncpa [#allocation8], 0 }
   0x2   :  { %14 = vsyncpa [#allocation11], 0 }
   0x3   :  { %15 = vsyncpa [#allocation14], 0  ;;  %s34_s26 = sshll.u32 %s3876_s1, 4  ;;  %s35_s26 = int_to_ptr.hbm [resolvable:$true] %s34_s26 }
   0x4   :  { %16 = vsyncpa [#allocation6], 0  ;;  %s2619_s27 = smov [#allocation7]   ;;  %s61_s8 = sshll.u32 %s3878_s3, 4  ;;  %s62_s8 = int_to_ptr.hbm [resolvable:$true] %s61_s8 }
   0x5   :  { %s36_s28 = sshll.u32 %s2619_s27, 4  ;;  %s2620_s9 = smov 512   ;;  %s37_s28 = int_to_ptr.vmem [resolvable:$true] %s36_s28 }
   0x6   :  { %s2621_s10 = smov 32   ;;  %s2622_s11 = smov [#allocation10]  }
   0x7   :  { %42 = dma.hbm_to_vmem [thread:$0]  %s35_s26, 8192, %s37_s28, [#allocation8], %s2620_s9, %s2620_s9, %s2621_s10  }
   0x8   :  { %s63_s12 = sshll.u32 %s2622_s11, 4  ;;  %s21_s15 = sshll.u32 %s3875_s0, 4  ;;  %s64_s12 = int_to_ptr.vmem [resolvable:$true] %s63_s12  ;;  %s22_s15 = int_to_ptr.hbm [resolvable:$true] %s21_s15 }
   0x9   :  { %66 = dma.hbm_to_vmem [thread:$0]  %s62_s8, 64, %s64_s12, [#allocation11]  }
   0xa   :  { %s2623_s1 = smov [#allocation4]   ;;  %s47_s3 = sshll.u32 %s3877_s2, 4  ;;  %s48_s3 = int_to_ptr.hbm [resolvable:$true] %s47_s3 }
   0xb   :  { %s23_s16 = sshll.u32 %s2623_s1, 4  ;;  %s2624_s19 = smov 128   ;;  %s24_s16 = int_to_ptr.vmem [resolvable:$true] %s23_s16 }
   0xc   :  { %s2625_s20 = smov 8   ;;  %s2626_s21 = smov [#allocation9]  }
   0xd   :  { %29 = dma.hbm_to_vmem [thread:$0]  %s22_s15, 1024, %s24_s16, [#allocation5], %s2624_s19, %s2624_s19, %s2625_s20  }
   0xe   :  { %s49_s22 = sshll.u32 %s2626_s21, 4  ;;  %s72_s24 = sshll.u32 %s3879_s4, 4  ;;  %s50_s22 = int_to_ptr.vmem [resolvable:$true] %s49_s22  ;;  %s73_s24 = int_to_ptr.hbm [resolvable:$true] %s72_s24 }
   0xf   :  { %55 = dma.hbm_to_vmem [thread:$0]  %s48_s3, 8192, %s50_s22, [#allocation8], %s2620_s9, %s2620_s9, %s2621_s10  }
  0x10   :  { %s82_s2 = sshll.u32 %s3880_s5, 4  ;;  %s2627_s27 = smov [#allocation12]   ;;  %s83_s2 = int_to_ptr.hbm [resolvable:$true] %s82_s2 }
  0x11   :  { %s74_s28 = sshll.u32 %s2627_s27, 4  ;;  %s2628_s29 = smov [#allocation13]   ;;  %s75_s28 = int_to_ptr.vmem [resolvable:$true] %s74_s28 }
  0x12   :  { %77 = dma.hbm_to_vmem [thread:$0]  %s73_s24, 128, %s75_s28, [#allocation11]  }
  0x13   :  { %s84_s30 = sshll.u32 %s2628_s29, 4  ;;  %s85_s30 = int_to_ptr.vmem [resolvable:$true] %s84_s30 }
  0x14   :  { %90 = dma.hbm_to_vmem [thread:$0]  %s83_s2, 2048, %s85_s30, [#allocation14], %s2624_s19, %s2624_s19, %s2625_s20  }
  0x15   :  { %2609 = dma.done.wait [#allocation5], 1024  }
  0x16   :  { %2610 = vsyncadd [#allocation5], 4294966272 }
  0x17   :  { %2611 = dma.done.wait [#allocation8], 16384  }
  0x18   :  { %2612 = vsyncadd [#allocation8], 4294950912 }
  0x19   :  { %2613 = dma.done.wait [#allocation11], 192  }
  0x1a   :  { %2614 = vsyncadd [#allocation11], 4294967104 }
  0x1b   :  { %2615 = dma.done.wait [#allocation14], 2048  }
  0x1c   :  { %2616 = vsyncadd [#allocation14], 4294965248  ;;  %v185_v0 = vld [vmem:[#allocation7 + $0x1e0] sm:$0xff]  ;;  %v188_v1 = vld [vmem:[#allocation7 + $0x1f8] sm:$0xff]  ;;  %s2238_s11 = sshll.u32 %s3882_s7, 4  ;;  %s2239_s11 = int_to_ptr.hbm [resolvable:$true] %s2238_s11 }
  0x1d   :  { %v181_v2 = vld [vmem:[#allocation7 + $0x1c0] sm:$0xff]  ;;  %199 = vmatpush.msra.mxu1 %v185_v0  ;;  %2285 = vmatpush.msra.mxu2 %v185_v0  ;;  %v184_v3 = vld [vmem:[#allocation7 + $0x1d8] sm:$0xff]  ;;  %v186_v49 = vld [vmem:[#allocation7 + $0x1e8] sm:$0xff] }
  0x1e   :  { %v2694_v4 = vld [vmem:[#allocation9 + $0x1e0] sm:$0xff]  ;;  %322 = vmatpush.msra.mxu3 %v188_v1  ;;  %v180_v7 = vld [vmem:[#allocation7 + $0x1b8] sm:$0xff]  ;;  %v187_v50 = vld [vmem:[#allocation7 + $0x1f0] sm:$0xff] }
  0x1f   :  { %467 = vmatpush.msra.mxu0 %v2694_v4  ;;  %v177_v5 = vld [vmem:[#allocation7 + $0x1a0] sm:$0xff]  ;;  %200 = vmatpush.msra.mxu1 %v181_v2  ;;  %v176_v10 = vld [vmem:[#allocation7 + $0x198] sm:$0xff]  ;;  %v182_v52 = vld [vmem:[#allocation7 + $0x1c8] sm:$0xff] }
  0x20   :  { %v2697_v6 = vld [vmem:[#allocation9 + $0x1c0] sm:$0xff]  ;;  %2286 = vmatpush.msra.mxu2 %v181_v2  ;;  %323 = vmatpush.msra.mxu3 %v184_v3  ;;  %v172_v13 = vld [vmem:[#allocation7 + $0x178] sm:$0xff]  ;;  %v183_v54 = vld [vmem:[#allocation7 + $0x1d0] sm:$0xff] }
  0x21   :  { %v2699_v8 = vld [vmem:[#allocation9 + $0x1a0] sm:$0xff]  ;;  %468 = vmatpush.msra.mxu0 %v2697_v6  ;;  %201 = vmatpush.msra.mxu1 %v177_v5  ;;  %v168_v16 = vld [vmem:[#allocation7 + $0x158] sm:$0xff]  ;;  %v178_v55 = vld [vmem:[#allocation7 + $0x1a8] sm:$0xff] }
  0x22   :  { %v173_v9 = vld [vmem:[#allocation7 + $0x180] sm:$0xff]  ;;  %2287 = vmatpush.msra.mxu2 %v177_v5  ;;  %324 = vmatpush.msra.mxu3 %v180_v7  ;;  %v164_v19 = vld [vmem:[#allocation7 + $0x138] sm:$0xff]  ;;  %v179_v57 = vld [vmem:[#allocation7 + $0x1b0] sm:$0xff] }
  0x23   :  { %v2702_v11 = vld [vmem:[#allocation9 + $0x180] sm:$0xff]  ;;  %469 = vmatpush.msra.mxu0 %v2699_v8  ;;  %202 = vmatpush.msra.mxu1 %v173_v9  ;;  %v160_v22 = vld [vmem:[#allocation7 + $0x118] sm:$0xff]  ;;  %v174_v58 = vld [vmem:[#allocation7 + $0x188] sm:$0xff] }
  0x24   :  { %v169_v12 = vld [vmem:[#allocation7 + $0x160] sm:$0xff]  ;;  %2288 = vmatpush.msra.mxu2 %v173_v9  ;;  %325 = vmatpush.msra.mxu3 %v176_v10  ;;  %v156_v25 = vld [vmem:[#allocation7 + $0xf8] sm:$0xff]  ;;  %v175_v60 = vld [vmem:[#allocation7 + $0x190] sm:$0xff] }
  0x25   :  { %v2705_v14 = vld [vmem:[#allocation9 + $0x160] sm:$0xff]  ;;  %470 = vmatpush.msra.mxu0 %v2702_v11  ;;  %203 = vmatpush.msra.mxu1 %v169_v12  ;;  %v152_v28 = vld [vmem:[#allocation7 + $0xd8] sm:$0xff]  ;;  %v2756_v61 = vld [vmem:[#allocation4 + $0x8] sm:$0xff] }
  0x26   :  { %v165_v15 = vld [vmem:[#allocation7 + $0x140] sm:$0xff]  ;;  %2289 = vmatpush.msra.mxu2 %v169_v12  ;;  %326 = vmatpush.msra.mxu3 %v172_v13  ;;  %v148_v31 = vld [vmem:[#allocation7 + $0xb8] sm:$0xff]  ;;  %v2759_v62 = vld [vmem:[#allocation4 + $0x28] sm:$0xff] }
  0x27   :  { %v2708_v17 = vld [vmem:[#allocation9 + $0x140] sm:$0xff]  ;;  %471 = vmatpush.msra.mxu0 %v2705_v14  ;;  %204 = vmatpush.msra.mxu1 %v165_v15  ;;  %v144_v34 = vld [vmem:[#allocation7 + $0x98] sm:$0xff]  ;;  %v170_v63 = vld [vmem:[#allocation7 + $0x168] sm:$0xff] }
  0x28   :  { %v161_v18 = vld [vmem:[#allocation7 + $0x120] sm:$0xff]  ;;  %2290 = vmatpush.msra.mxu2 %v165_v15  ;;  %327 = vmatpush.msra.mxu3 %v168_v16  ;;  %v140_v37 = vld [vmem:[#allocation7 + $0x78] sm:$0xff]  ;;  %v171_v0 = vld [vmem:[#allocation7 + $0x170] sm:$0xff] }
  0x29   :  { %v2711_v20 = vld [vmem:[#allocation9 + $0x120] sm:$0xff]  ;;  %472 = vmatpush.msra.mxu0 %v2708_v17  ;;  %205 = vmatpush.msra.mxu1 %v161_v18  ;;  %v136_v40 = vld [vmem:[#allocation7 + $0x58] sm:$0xff]  ;;  %v166_v1 = vld [vmem:[#allocation7 + $0x148] sm:$0xff] }
  0x2a   :  { %v157_v21 = vld [vmem:[#allocation7 + $0x100] sm:$0xff]  ;;  %2291 = vmatpush.msra.mxu2 %v161_v18  ;;  %328 = vmatpush.msra.mxu3 %v164_v19  ;;  %v132_v43 = vld [vmem:[#allocation7 + $0x38] sm:$0xff]  ;;  %v167_v3 = vld [vmem:[#allocation7 + $0x150] sm:$0xff] }
  0x2b   :  { %v2714_v23 = vld [vmem:[#allocation9 + $0x100] sm:$0xff]  ;;  %473 = vmatpush.msra.mxu0 %v2711_v20  ;;  %206 = vmatpush.msra.mxu1 %v157_v21  ;;  %v128_v46 = vld [vmem:[#allocation7 + $0x18] sm:$0xff]  ;;  %v162_v5 = vld [vmem:[#allocation7 + $0x128] sm:$0xff] }
  0x2c   :  { %v153_v24 = vld [vmem:[#allocation7 + $0xe0] sm:$0xff]  ;;  %2292 = vmatpush.msra.mxu2 %v157_v21  ;;  %329 = vmatpush.msra.mxu3 %v160_v22  ;;  %v2750_v56 = vld [vmem:[#allocation9 + $0x1f8] sm:$0xff]  ;;  %v158_v9 = vld [vmem:[#allocation7 + $0x108] sm:$0xff] }
  0x2d   :  { %v2717_v26 = vld [vmem:[#allocation9 + $0xe0] sm:$0xff]  ;;  %474 = vmatpush.msra.mxu0 %v2714_v23  ;;  %207 = vmatpush.msra.mxu1 %v153_v24  ;;  %v2754_v59 = vld [vmem:[#allocation9 + $0x1d8] sm:$0xff]  ;;  %v159_v12 = vld [vmem:[#allocation7 + $0x110] sm:$0xff] }
  0x2e   :  { %v149_v27 = vld [vmem:[#allocation7 + $0xc0] sm:$0xff]  ;;  %2293 = vmatpush.msra.mxu2 %v153_v24  ;;  %330 = vmatpush.msra.mxu3 %v156_v25  ;;  %v2764_v2 = vld [vmem:[#allocation9 + $0x1b8] sm:$0xff]  ;;  %v2774_v13 = vld [vmem:[#allocation4 + $0x10] sm:$0xff] }
  0x2f   :  { %v2720_v29 = vld [vmem:[#allocation9 + $0xc0] sm:$0xff]  ;;  %475 = vmatpush.msra.mxu0 %v2717_v26  ;;  %208 = vmatpush.msra.mxu1 %v149_v27  ;;  %v2768_v7 = vld [vmem:[#allocation9 + $0x198] sm:$0xff]  ;;  %v2777_v15 = vld [vmem:[#allocation4 + $0x30] sm:$0xff] }
  0x30   :  { %v145_v30 = vld [vmem:[#allocation7 + $0xa0] sm:$0xff]  ;;  %2294 = vmatpush.msra.mxu2 %v149_v27  ;;  %331 = vmatpush.msra.mxu3 %v152_v28  ;;  %v2771_v10 = vld [vmem:[#allocation9 + $0x178] sm:$0xff]  ;;  %v154_v16 = vld [vmem:[#allocation7 + $0xe8] sm:$0xff] }
  0x31   :  { %v2723_v32 = vld [vmem:[#allocation9 + $0xa0] sm:$0xff]  ;;  %476 = vmatpush.msra.mxu0 %v2720_v29  ;;  %209 = vmatpush.msra.mxu1 %v145_v30  ;;  %v155_v18 = vld [vmem:[#allocation7 + $0xf0] sm:$0xff]  ;;  %v2782_v19 = vld [vmem:[#allocation9 + $0x158] sm:$0xff] }
  0x32   :  { %v141_v33 = vld [vmem:[#allocation7 + $0x80] sm:$0xff]  ;;  %2295 = vmatpush.msra.mxu2 %v145_v30  ;;  %332 = vmatpush.msra.mxu3 %v148_v31  ;;  %v151_v21 = vld [vmem:[#allocation7 + $0xd0] sm:$0xff]  ;;  %v146_v22 = vld [vmem:[#allocation7 + $0xa8] sm:$0xff] }
  0x33   :  { %v2726_v35 = vld [vmem:[#allocation9 + $0x80] sm:$0xff]  ;;  %477 = vmatpush.msra.mxu0 %v2723_v32  ;;  %210 = vmatpush.msra.mxu1 %v141_v33  ;;  %v2786_v24 = vld [vmem:[#allocation9 + $0x138] sm:$0xff]  ;;  %v142_v25 = vld [vmem:[#allocation7 + $0x88] sm:$0xff] }
  0x34   :  { %v137_v36 = vld [vmem:[#allocation7 + $0x60] sm:$0xff]  ;;  %2296 = vmatpush.msra.mxu2 %v141_v33  ;;  %333 = vmatpush.msra.mxu3 %v144_v34  ;;  %v2789_v27 = vld [vmem:[#allocation9 + $0x118] sm:$0xff]  ;;  %v143_v28 = vld [vmem:[#allocation7 + $0x90] sm:$0xff] }
  0x35   :  { %v2729_v38 = vld [vmem:[#allocation9 + $0x60] sm:$0xff]  ;;  %478 = vmatpush.msra.mxu0 %v2726_v35  ;;  %211 = vmatpush.msra.mxu1 %v137_v36  ;;  %v2792_v30 = vld [vmem:[#allocation4 + $0x18] sm:$0xff]  ;;  %v138_v33 = vld [vmem:[#allocation7 + $0x68] sm:$0xff] }
  0x36   :  { %v133_v39 = vld [vmem:[#allocation7 + $0x40] sm:$0xff]  ;;  %2297 = vmatpush.msra.mxu2 %v137_v36  ;;  %334 = vmatpush.msra.mxu3 %v140_v37  ;;  %v2795_v31 = vld [vmem:[#allocation4 + $0x38] sm:$0xff]  ;;  %v139_v34 = vld [vmem:[#allocation7 + $0x70] sm:$0xff] }
  0x37   :  { %v2732_v41 = vld [vmem:[#allocation9 + $0x40] sm:$0xff]  ;;  %479 = vmatpush.msra.mxu0 %v2729_v38  ;;  %212 = vmatpush.msra.mxu1 %v133_v39  ;;  %v2800_v36 = vld [vmem:[#allocation9 + $0xf8] sm:$0xff]  ;;  %v135_v37 = vld [vmem:[#allocation7 + $0x50] sm:$0xff] }
  0x38   :  { %v129_v42 = vld [vmem:[#allocation7 + $0x20] sm:$0xff]  ;;  %2298 = vmatpush.msra.mxu2 %v133_v39  ;;  %335 = vmatpush.msra.mxu3 %v136_v40  ;;  %v130_v39 = vld [vmem:[#allocation7 + $0x28] sm:$0xff]  ;;  %v2804_v40 = vld [vmem:[#allocation9 + $0xd8] sm:$0xff] }
  0x39   :  { %v2735_v44 = vld [vmem:[#allocation9 + $0x20] sm:$0xff]  ;;  %480 = vmatpush.msra.mxu0 %v2732_v41  ;;  %213 = vmatpush.msra.mxu1 %v129_v42 }
  0x3a   :  { %v125_v45 = vld [vmem:[#allocation7] sm:$0xff]  ;;  %2299 = vmatpush.msra.mxu2 %v129_v42  ;;  %336 = vmatpush.msra.mxu3 %v132_v43  ;;  %v126_v42 = vld [vmem:[#allocation7 + $0x8] sm:$0xff]  ;;  %v2807_v43 = vld [vmem:[#allocation9 + $0xb8] sm:$0xff] }
  0x3b   :  { %v2738_v47 = vld [vmem:[#allocation4] sm:$0xff]  ;;  %481 = vmatpush.msra.mxu0 %v2735_v44  ;;  %214 = vmatpush.msra.mxu1 %v125_v45 }
  0x3c   :  { %v2741_v48 = vld [vmem:[#allocation4 + $0x20] sm:$0xff]  ;;  %2300 = vmatpush.msra.mxu2 %v125_v45  ;;  %337 = vmatpush.msra.mxu3 %v128_v46  ;;  %v127_v45 = vld [vmem:[#allocation7 + $0x10] sm:$0xff]  ;;  %v2811_v46 = vld [vmem:[#allocation9 + $0x1e8] sm:$0xff] }
  0x3d   :  { %215 = vmatmul.f32.vlgmr.msra.gmra.mxu1 %v2738_v47  ;;  %v2744_v51 = vld [vmem:[#allocation9] sm:$0xff]  ;;  %227 = vmatmul.f32.vlgmr.msra.gmra.mxu2 %v2741_v48 }
  0x3e   :  { %240 = vmatpush.msrb.mxu1 %v186_v49  ;;  %v2747_v53 = vld [vmem:[#allocation12] sm:$0xff]  ;;  %338 = vmatmul.f32.vlgmr.msra.gmra.mxu3 %v2738_v47  ;;  %v2814_v49 = vld [vmem:[#allocation9 + $0x1f0] sm:$0xff] }
  0x3f   :  { %281 = vmatpush.msrb.mxu2 %v187_v50  ;;  %482 = vmatpush.msra.mxu0 %v2744_v51  ;;  %v2818_v50 = vld [vmem:[#allocation9 + $0x1c8] sm:$0xff] }
  0x40   :  { %241 = vmatpush.msrb.mxu1 %v182_v52  ;;  %483 = vmatmul.f32.vlgmr.msra.gmra.mxu0 %v2747_v53  ;;  %v2824_v52 = vld [vmem:[#allocation9 + $0x1d0] sm:$0xff] }
  0x41   :  { %282 = vmatpush.msrb.mxu2 %v183_v54  ;;  %527 = vmatpush.msrb.mxu3 %v2750_v56  ;;  %v2830_v54 = vld [vmem:[#allocation9 + $0x78] sm:$0xff] }
  0x42   :  { %242 = vmatpush.msrb.mxu1 %v178_v55  ;;  %686 = vmatpush.msrb.mxu0 %v2694_v4  ;;  %v163_v4 = vld [vmem:[#allocation7 + $0x130] sm:$0xff] }
  0x43   :  { %283 = vmatpush.msrb.mxu2 %v179_v57  ;;  %528 = vmatpush.msrb.mxu3 %v2754_v59  ;;  %v2833_v55 = vld [vmem:[#allocation9 + $0x1b0] sm:$0xff]  ;;  %v2839_v57 = vld [vmem:[#allocation9 + $0x58] sm:$0xff] }
  0x44   :  { %243 = vmatpush.msrb.mxu1 %v174_v58  ;;  %687 = vmatpush.msrb.mxu0 %v2697_v6  ;;  %v150_v6 = vld [vmem:[#allocation7 + $0xc8] sm:$0xff]  ;;  %v2843_v58 = vld [vmem:[#allocation9 + $0x190] sm:$0xff] }
  0x45   :  { %284 = vmatpush.msrb.mxu2 %v175_v60  ;;  %218 = vmatmul.f32.gmra.mxu1 %v2756_v61  ;;  %v2847_v60 = vld [vmem:[#allocation9 + $0x168] sm:$0xff] }
  0x46   :  { %230 = vmatmul.f32.gmra.mxu2 %v2759_v62  ;;  %244 = vmatpush.msrb.mxu1 %v170_v63  ;;  %v2851_v63 = vld [vmem:[#allocation9 + $0x170] sm:$0xff] }
  0x47   :  { %341 = vmatmul.f32.gmra.mxu3 %v2756_v61  ;;  %285 = vmatpush.msrb.mxu2 %v171_v0  ;;  %v2858_v0 = vld [vmem:[#allocation9 + $0x38] sm:$0xff] }
  0x48   :  { %245 = vmatpush.msrb.mxu1 %v166_v1  ;;  %529 = vmatpush.msrb.mxu3 %v2764_v2  ;;  %v2862_v1 = vld [vmem:[#allocation9 + $0x150] sm:$0xff] }
  0x49   :  { %286 = vmatpush.msrb.mxu2 %v167_v3  ;;  %688 = vmatpush.msrb.mxu0 %v2699_v8  ;;  %v147_v8 = vld [vmem:[#allocation7 + $0xb0] sm:$0xff]  ;;  %v2868_v3 = vld [vmem:[#allocation9 + $0x18] sm:$0xff] }
  0x4a   :  { %246 = vmatpush.msrb.mxu1 %v162_v5  ;;  %530 = vmatpush.msrb.mxu3 %v2768_v7  ;;  %v2871_v5 = vld [vmem:[#allocation9 + $0x130] sm:$0xff] }
  0x4b   :  { %287 = vmatpush.msrb.mxu2 %v163_v4  ;;  %689 = vmatpush.msrb.mxu0 %v2702_v11  ;;  %v134_v11 = vld [vmem:[#allocation7 + $0x48] sm:$0xff]  ;;  %v2880_v4 = vld [vmem:[#allocation9 + $0x110] sm:$0xff] }
  0x4c   :  { %247 = vmatpush.msrb.mxu1 %v158_v9  ;;  %531 = vmatpush.msrb.mxu3 %v2771_v10  ;;  %v2883_v9 = vld [vmem:[#allocation9 + $0xe8] sm:$0xff] }
  0x4d   :  { %288 = vmatpush.msrb.mxu2 %v159_v12  ;;  %221 = vmatmul.f32.gmra.mxu1 %v2774_v13  ;;  %v2887_v12 = vld [vmem:[#allocation9 + $0xf0] sm:$0xff] }
  0x4e   :  { %233 = vmatmul.f32.gmra.mxu2 %v2777_v15  ;;  %248 = vmatpush.msrb.mxu1 %v154_v16  ;;  %v2896_v16 = vld [vmem:[#allocation9 + $0xd0] sm:$0xff] }
  0x4f   :  { %344 = vmatmul.f32.gmra.mxu3 %v2774_v13  ;;  %289 = vmatpush.msrb.mxu2 %v155_v18  ;;  %v2900_v18 = vld [vmem:[#allocation9 + $0xa8] sm:$0xff] }
  0x50   :  { %249 = vmatpush.msrb.mxu1 %v150_v6  ;;  %532 = vmatpush.msrb.mxu3 %v2782_v19  ;;  %v2907_v6 = vld [vmem:[#allocation9 + $0x88] sm:$0xff] }
  0x51   :  { %290 = vmatpush.msrb.mxu2 %v151_v21  ;;  %690 = vmatpush.msrb.mxu0 %v2705_v14  ;;  %v131_v14 = vld [vmem:[#allocation7 + $0x30] sm:$0xff]  ;;  %v2915_v21 = vld [vmem:[#allocation9 + $0x68] sm:$0xff] }
  0x52   :  { %250 = vmatpush.msrb.mxu1 %v146_v22  ;;  %533 = vmatpush.msrb.mxu3 %v2786_v24  ;;  %v2919_v22 = vld [vmem:[#allocation9 + $0x70] sm:$0xff] }
  0x53   :  { %291 = vmatpush.msrb.mxu2 %v147_v8  ;;  %691 = vmatpush.msrb.mxu0 %v2708_v17  ;;  %v2820_v17 = vld [vmem:[#allocation9 + $0x98] sm:$0xff]  ;;  %v2928_v8 = vld [vmem:[#allocation9 + $0x50] sm:$0xff] }
  0x54   :  { %251 = vmatpush.msrb.mxu1 %v142_v25  ;;  %534 = vmatpush.msrb.mxu3 %v2789_v27  ;;  %v2935_v25 = vld [vmem:[#allocation9 + $0x30] sm:$0xff] }
  0x55   :  { %292 = vmatpush.msrb.mxu2 %v143_v28  ;;  %224 = vmatmul.f32.gmra.mxu1 %v2792_v30  ;;  %v2939_v28 = vld [vmem:[#allocation9 + $0x8] sm:$0xff] }
  0x56   :  { %236 = vmatmul.f32.gmra.mxu2 %v2795_v31  ;;  %252 = vmatpush.msrb.mxu1 %v138_v33 }
  0x57   :  { %347 = vmatmul.f32.gmra.mxu3 %v2792_v30  ;;  %293 = vmatpush.msrb.mxu2 %v139_v34 }
  0x58   :  { %253 = vmatpush.msrb.mxu1 %v134_v11  ;;  %535 = vmatpush.msrb.mxu3 %v2800_v36 }
  0x59   :  { %294 = vmatpush.msrb.mxu2 %v135_v37  ;;  %692 = vmatpush.msrb.mxu0 %v2711_v20  ;;  %v2828_v20 = vld [vmem:[#allocation9 + $0x1a8] sm:$0xff] }
  0x5a   :  { %254 = vmatpush.msrb.mxu1 %v130_v39  ;;  %536 = vmatpush.msrb.mxu3 %v2804_v40 }
  0x5b   :  { %295 = vmatpush.msrb.mxu2 %v131_v14  ;;  %693 = vmatpush.msrb.mxu0 %v2714_v23  ;;  %v2856_v23 = vld [vmem:[#allocation9 + $0x148] sm:$0xff] }
  0x5c   :  { %255 = vmatpush.msrb.mxu1 %v126_v42  ;;  %537 = vmatpush.msrb.mxu3 %v2807_v43 }
  0x5d   :  { %296 = vmatpush.msrb.mxu2 %v127_v45  ;;  %256 = vmatmul.f32.vlgmr.msrb.gmra.mxu1 %v2738_v47 }
  0x5e   :  { %297 = vmatmul.f32.vlgmr.msrb.gmra.mxu2 %v2738_v47  ;;  %487 = vmatpush.msra.mxu1 %v2811_v46  ;;  %v2837_v47 = vld [vmem:[#allocation9 + $0x188] sm:$0xff] }
  0x5f   :  { %350 = vmatmul.f32.gmra.mxu3 %v2741_v48  ;;  %507 = vmatpush.msra.mxu2 %v2814_v49 }
  0x60   :  { %488 = vmatpush.msra.mxu1 %v2818_v50  ;;  %538 = vmatpush.msrb.mxu3 %v2820_v17 }
  0x61   :  { %508 = vmatpush.msra.mxu2 %v2824_v52  ;;  %694 = vmatpush.msrb.mxu0 %v2717_v26  ;;  %v2866_v26 = vld [vmem:[#allocation9 + $0x128] sm:$0xff] }
  0x62   :  { %489 = vmatpush.msra.mxu1 %v2828_v20  ;;  %539 = vmatpush.msrb.mxu3 %v2830_v54 }
  0x63   :  { %509 = vmatpush.msra.mxu2 %v2833_v55  ;;  %695 = vmatpush.msrb.mxu0 %v2720_v29  ;;  %v2892_v29 = vld [vmem:[#allocation9 + $0xc8] sm:$0xff] }
  0x64   :  { %490 = vmatpush.msra.mxu1 %v2837_v47  ;;  %540 = vmatpush.msrb.mxu3 %v2839_v57 }
  0x65   :  { %259 = vmatmul.f32.gmra.mxu1 %v2756_v61  ;;  %510 = vmatpush.msra.mxu2 %v2843_v58 }
  0x66   :  { %300 = vmatmul.f32.gmra.mxu2 %v2756_v61  ;;  %491 = vmatpush.msra.mxu1 %v2847_v60  ;;  %v2875_v61 = vld [vmem:[#allocation9 + $0x108] sm:$0xff] }
  0x67   :  { %353 = vmatmul.f32.gmra.mxu3 %v2759_v62  ;;  %511 = vmatpush.msra.mxu2 %v2851_v63 }
  0x68   :  { %492 = vmatpush.msra.mxu1 %v2856_v23  ;;  %541 = vmatpush.msrb.mxu3 %v2858_v0 }
  0x69   :  { %512 = vmatpush.msra.mxu2 %v2862_v1  ;;  %696 = vmatpush.msrb.mxu0 %v2723_v32  ;;  %v2903_v32 = vld [vmem:[#allocation9 + $0xb0] sm:$0xff] }
  0x6a   :  { %493 = vmatpush.msra.mxu1 %v2866_v26  ;;  %542 = vmatpush.msrb.mxu3 %v2868_v3 }
  0x6b   :  { %513 = vmatpush.msra.mxu2 %v2871_v5  ;;  %697 = vmatpush.msrb.mxu0 %v2726_v35  ;;  %v2924_v35 = vld [vmem:[#allocation9 + $0x48] sm:$0xff] }
  0x6c   :  { %746 = vmatpush.msra.mxu3 %v2750_v56  ;;  %494 = vmatpush.msra.mxu1 %v2875_v61 }
  0x6d   :  { %262 = vmatmul.f32.gmra.mxu1 %v2774_v13  ;;  %514 = vmatpush.msra.mxu2 %v2880_v4 }
  0x6e   :  { %303 = vmatmul.f32.gmra.mxu2 %v2774_v13  ;;  %495 = vmatpush.msra.mxu1 %v2883_v9  ;;  %v2911_v13 = vld [vmem:[#allocation9 + $0x90] sm:$0xff] }
  0x6f   :  { %356 = vmatmul.f32.gmra.mxu3 %v2777_v15  ;;  %515 = vmatpush.msra.mxu2 %v2887_v12 }
  0x70   :  { %496 = vmatpush.msra.mxu1 %v2892_v29  ;;  %747 = vmatpush.msra.mxu3 %v2754_v59 }
  0x71   :  { %516 = vmatpush.msra.mxu2 %v2896_v16  ;;  %698 = vmatpush.msrb.mxu0 %v2729_v38  ;;  %v2932_v38 = vld [vmem:[#allocation9 + $0x28] sm:$0xff] }
  0x72   :  { %497 = vmatpush.msra.mxu1 %v2900_v18  ;;  %748 = vmatpush.msra.mxu3 %v2764_v2 }
  0x73   :  { %517 = vmatpush.msra.mxu2 %v2903_v32  ;;  %699 = vmatpush.msrb.mxu0 %v2732_v41 }
  0x74   :  { %498 = vmatpush.msra.mxu1 %v2907_v6  ;;  %749 = vmatpush.msra.mxu3 %v2768_v7 }
  0x75   :  { %265 = vmatmul.f32.gmra.mxu1 %v2792_v30  ;;  %518 = vmatpush.msra.mxu2 %v2911_v13 }
  0x76   :  { %306 = vmatmul.f32.gmra.mxu2 %v2792_v30  ;;  %499 = vmatpush.msra.mxu1 %v2915_v21  ;;  %v2943_v30 = vld [vmem:[#allocation9 + $0x10] sm:$0xff] }
  0x77   :  { %359 = vmatmul.f32.gmra.mxu3 %v2795_v31  ;;  %519 = vmatpush.msra.mxu2 %v2919_v22 }
  0x78   :  { %500 = vmatpush.msra.mxu1 %v2924_v35  ;;  %750 = vmatpush.msra.mxu3 %v2771_v10 }
  0x79   :  { %520 = vmatpush.msra.mxu2 %v2928_v8  ;;  %700 = vmatpush.msrb.mxu0 %v2735_v44  ;;  %v189_v44 = vld [vmem:[#allocation10] sm:$0xf] }
  0x7a   :  { %501 = vmatpush.msra.mxu1 %v2932_v38  ;;  %751 = vmatpush.msra.mxu3 %v2782_v19 }
  0x7b   :  { %521 = vmatpush.msra.mxu2 %v2935_v25  ;;  %701 = vmatpush.msrb.mxu0 %v2744_v51 }
  0x7c   :  { %502 = vmatpush.msra.mxu1 %v2939_v28  ;;  %752 = vmatpush.msra.mxu3 %v2786_v24 }
  0x7d   :  { %268 = vmatmul.f32.gmra.mxu1 %v2741_v48  ;;  %522 = vmatpush.msra.mxu2 %v2943_v30 }
  0x7e   :  { %309 = vmatmul.f32.gmra.mxu2 %v2741_v48  ;;  %706 = vmatpush.msrb.mxu1 %v2811_v46  ;;  %v191_v48 = vperm.slane %v189_v44, 0 }
  0x7f   :  { %543 = vmatmul.f32.vlgmr.msrb.gmra.mxu3 %v2747_v53  ;;  %726 = vmatpush.msrb.mxu2 %v2814_v49 }
  0x80   :  { %707 = vmatpush.msrb.mxu1 %v2818_v50  ;;  %753 = vmatpush.msra.mxu3 %v2789_v27 }
  0x81   :  { %727 = vmatpush.msrb.mxu2 %v2824_v52 }
  0x82   :  { %708 = vmatpush.msrb.mxu1 %v2828_v20  ;;  %754 = vmatpush.msra.mxu3 %v2800_v36 }
  0x83   :  { %728 = vmatpush.msrb.mxu2 %v2833_v55 }
  0x84   :  { %709 = vmatpush.msrb.mxu1 %v2837_v47  ;;  %755 = vmatpush.msra.mxu3 %v2804_v40 }
  0x85   :  { %271 = vmatmul.f32.gmra.mxu1 %v2759_v62  ;;  %729 = vmatpush.msrb.mxu2 %v2843_v58 }
  0x86   :  { %312 = vmatmul.f32.gmra.mxu2 %v2759_v62  ;;  %710 = vmatpush.msrb.mxu1 %v2847_v60 }
  0x87   :  { %730 = vmatpush.msrb.mxu2 %v2851_v63  ;;  %756 = vmatpush.msra.mxu3 %v2807_v43 }
  0x88   :  { %711 = vmatpush.msrb.mxu1 %v2856_v23 }
  0x89   :  { %731 = vmatpush.msrb.mxu2 %v2862_v1  ;;  %757 = vmatpush.msra.mxu3 %v2820_v17 }
  0x8a   :  { %712 = vmatpush.msrb.mxu1 %v2866_v26 }
  0x8b   :  { %732 = vmatpush.msrb.mxu2 %v2871_v5  ;;  %758 = vmatpush.msra.mxu3 %v2830_v54 }
  0x8c   :  { %713 = vmatpush.msrb.mxu1 %v2875_v61 }
  0x8d   :  { %274 = vmatmul.f32.gmra.mxu1 %v2777_v15  ;;  %733 = vmatpush.msrb.mxu2 %v2880_v4 }
  0x8e   :  { %315 = vmatmul.f32.gmra.mxu2 %v2777_v15  ;;  %714 = vmatpush.msrb.mxu1 %v2883_v9 }
  0x8f   :  { %734 = vmatpush.msrb.mxu2 %v2887_v12  ;;  %759 = vmatpush.msra.mxu3 %v2839_v57 }
  0x90   :  { %715 = vmatpush.msrb.mxu1 %v2892_v29 }
  0x91   :  { %735 = vmatpush.msrb.mxu2 %v2896_v16  ;;  %760 = vmatpush.msra.mxu3 %v2858_v0 }
  0x92   :  { %716 = vmatpush.msrb.mxu1 %v2900_v18 }
  0x93   :  { %736 = vmatpush.msrb.mxu2 %v2903_v32  ;;  %761 = vmatpush.msra.mxu3 %v2868_v3 }
  0x94   :  { %717 = vmatpush.msrb.mxu1 %v2907_v6 }
  0x95   :  { %966 = vmatpush.msrb.mxu3 %v2750_v56  ;;  %277 = vmatmul.f32.gmra.mxu1 %v2795_v31 }
  0x96   :  { %737 = vmatpush.msrb.mxu2 %v2911_v13  ;;  %718 = vmatpush.msrb.mxu1 %v2915_v21 }
  0x97   :  { %318 = vmatmul.f32.gmra.mxu2 %v2795_v31  ;;  %967 = vmatpush.msrb.mxu3 %v2754_v59 }
  0x98   :  { %738 = vmatpush.msrb.mxu2 %v2919_v22  ;;  %719 = vmatpush.msrb.mxu1 %v2924_v35 }
  0x99   :  { %968 = vmatpush.msrb.mxu3 %v2764_v2 }
  0x9a   :  { %739 = vmatpush.msrb.mxu2 %v2928_v8  ;;  %720 = vmatpush.msrb.mxu1 %v2932_v38 }
  0x9b   :  { %969 = vmatpush.msrb.mxu3 %v2768_v7  ;;  %v3058_v7 = vperm.slane %v189_v44, 3 }
  0x9c   :  { %740 = vmatpush.msrb.mxu2 %v2935_v25  ;;  %721 = vmatpush.msrb.mxu1 %v2939_v28 }
  0x9d   :  { %503 = vmatmul.f32.vlgmr.msra.gmra.mxu1 %v2747_v53  ;;  %970 = vmatpush.msrb.mxu3 %v2771_v10 }
  0x9e   :  { %741 = vmatpush.msrb.mxu2 %v2943_v30  ;;  %926 = vmatpush.msra.mxu1 %v2811_v46  ;;  %v192_v46 = vperm.slane %v189_v44, 1 }
  0x9f   :  { %523 = vmatmul.f32.vlgmr.msra.gmra.mxu2 %v2747_v53  ;;  %971 = vmatpush.msrb.mxu3 %v2782_v19 }
  0xa0   :  { %946 = vmatpush.msra.mxu2 %v2814_v49  ;;  %927 = vmatpush.msra.mxu1 %v2818_v50 }
  0xa1   :  { %972 = vmatpush.msrb.mxu3 %v2786_v24 }
  0xa2   :  { %947 = vmatpush.msra.mxu2 %v2824_v52  ;;  %928 = vmatpush.msra.mxu1 %v2828_v20 }
  0xa3   :  { %973 = vmatpush.msrb.mxu3 %v2789_v27 }
  0xa4   :  { %948 = vmatpush.msra.mxu2 %v2833_v55  ;;  %929 = vmatpush.msra.mxu1 %v2837_v47 }
  0xa5   :  { %974 = vmatpush.msrb.mxu3 %v2800_v36 }
  0xa6   :  { %949 = vmatpush.msra.mxu2 %v2843_v58  ;;  %930 = vmatpush.msra.mxu1 %v2847_v60 }
  0xa7   :  { %975 = vmatpush.msrb.mxu3 %v2804_v40 }
  0xa8   :  { %950 = vmatpush.msra.mxu2 %v2851_v63  ;;  %931 = vmatpush.msra.mxu1 %v2856_v23 }
  0xa9   :  { %976 = vmatpush.msrb.mxu3 %v2807_v43 }
  0xaa   :  { %951 = vmatpush.msra.mxu2 %v2862_v1  ;;  %932 = vmatpush.msra.mxu1 %v2866_v26 }
  0xab   :  { %977 = vmatpush.msrb.mxu3 %v2820_v17 }
  0xac   :  { %952 = vmatpush.msra.mxu2 %v2871_v5  ;;  %933 = vmatpush.msra.mxu1 %v2875_v61 }
  0xad   :  { %978 = vmatpush.msrb.mxu3 %v2830_v54  ;;  %v193_v54 = vperm.slane %v189_v44, 2 }
  0xae   :  { %953 = vmatpush.msra.mxu2 %v2880_v4  ;;  %934 = vmatpush.msra.mxu1 %v2883_v9 }
  0xaf   :  { %979 = vmatpush.msrb.mxu3 %v2839_v57 }
  0xb0   :  { %954 = vmatpush.msra.mxu2 %v2887_v12  ;;  %935 = vmatpush.msra.mxu1 %v2892_v29 }
  0xb1   :  { %980 = vmatpush.msrb.mxu3 %v2858_v0 }
  0xb2   :  { %955 = vmatpush.msra.mxu2 %v2896_v16  ;;  %936 = vmatpush.msra.mxu1 %v2900_v18 }
  0xb3   :  { %981 = vmatpush.msrb.mxu3 %v2868_v3 }
  0xb4   :  { %956 = vmatpush.msra.mxu2 %v2903_v32  ;;  %937 = vmatpush.msra.mxu1 %v2907_v6 }
  0xb6   :  { %957 = vmatpush.msra.mxu2 %v2911_v13  ;;  %938 = vmatpush.msra.mxu1 %v2915_v21 }
  0xb8   :  { %958 = vmatpush.msra.mxu2 %v2919_v22  ;;  %939 = vmatpush.msra.mxu1 %v2924_v35 }
  0xba   :  { %959 = vmatpush.msra.mxu2 %v2928_v8  ;;  %v216_v41 = vpop.f32.mrf.mxu1  ;;  %940 = vmatpush.msra.mxu1 %v2932_v38 }
  0xbb   :  { %v217_v13 = vadd.f32 %v216_v41, %v191_v48 }
  0xbc   :  { %960 = vmatpush.msra.mxu2 %v2935_v25  ;;  %941 = vmatpush.msra.mxu1 %v2939_v28 }
  0xbd   :  { %v484_v22 = vpop.f32.mrf.mxu0 }
  0xbe   :  { %961 = vmatpush.msra.mxu2 %v2943_v30  ;;  %v547_v35 = vadd.f32 %v484_v22, %v217_v13 }
  0xc0   :  { %v228_v51 = vpop.f32.mrf.mxu2  ;;  %v2261_v28 = vmul.f32 -1.442695, %v547_v35 }
  0xc1   :  { %v3052_v56 = vadd.f32 %v228_v51, %v191_v48  ;;  %v3054_v59 = vpop.f32.mrf.mxu3 }
  0xc2   :  { %v219_v62 = vpop.f32.mrf.mxu1  ;;  %2313 = vpow2.f32 %v2261_v28 }
  0xc3   :  { %3890 = vst [vmem:[#allocation21_spill] sm:$0xff] %v3052_v56  ;;  %v3056_v2 = vadd.f32 %v219_v62, %v191_v48 }
  0xc9   :  { %v231_v10 = vpop.f32.mrf.mxu2 }
  0xca   :  { %v3060_v15 = vadd.f32 %v231_v10, %v191_v48  ;;  %v342_v19 = vpop.f32.mrf.mxu3  ;;  %v222_v24 = vpop.f32.mrf.mxu1 }
  0xcb   :  { %v3063_v27 = vadd.f32 %v342_v19, %v3058_v7  ;;  %v3065_v31 = vadd.f32 %v222_v24, %v191_v48  ;;  %v2314_v19 = vpop.eup %2313 }
  0xcc   :  { %3891 = vst [vmem:[#allocation22_spill] sm:$0xff] %v3060_v15  ;;  %v560_v41 = vadd.f32 1.0, %v2314_v19 }
  0xce   :  { %2315 = vrcp.f32 %v560_v41  ;;  %vm568_vm1 = vweird.f32 %v560_v41  ;;  %v574_v22 = vand.u32 2147483648, %v560_v41 }
  0xd0   :  { %v575_v19 = vor.u32 1.1754944e-38, %v574_v22  ;;  %v3155_v22 = vld [vmem:[#allocation9 + $0xe0] sm:$0xff] }
  0xd1   :  { %v234_v33 = vpop.f32.mrf.mxu2 }
  0xd2   :  { %v3067_v34 = vadd.f32 %v234_v33, %v191_v48  ;;  %v345_v11 = vpop.f32.mrf.mxu3  ;;  %v225_v36 = vpop.f32.mrf.mxu1 }
  0xd3   :  { %v3070_v37 = vadd.f32 %v345_v11, %v3058_v7  ;;  %v3072_v39 = vadd.f32 %v225_v36, %v191_v48 }
  0xd4   :  { %3892 = vst [vmem:[#allocation23_spill] sm:$0xff] %v3067_v34  ;;  %v3360_v34 = vld [vmem:[#allocation9 + $0x8] sm:$0xff] }
  0xd5   :  { %3893 = vst [vmem:[#allocation24_spill] sm:$0xff] %v3072_v39 }
  0xd9   :  { %v237_v40 = vpop.f32.mrf.mxu2 }
  0xda   :  { %v3074_v14 = vadd.f32 %v237_v40, %v191_v48  ;;  %v348_v42 = vpop.f32.mrf.mxu3  ;;  %v257_v43 = vpop.f32.mrf.mxu1 }
  0xdb   :  { %v3077_v45 = vadd.f32 %v348_v42, %v3058_v7  ;;  %v258_v48 = vadd.f32 %v257_v43, %v192_v46 }
  0xdc   :  { %3894 = vst [vmem:[#allocation25_spill] sm:$0xff] %v3074_v14  ;;  %v3343_v14 = vld [vmem:[#allocation9 + $0x50] sm:$0xff] }
  0xdd   :  { %3895 = vst [vmem:[#allocation26_spill] sm:$0xff] %v3077_v45 }
  0xe1   :  { %v298_v49 = vpop.f32.mrf.mxu2 }
  0xe2   :  { %v351_v50 = vpop.f32.mrf.mxu3  ;;  %v260_v17 = vpop.f32.mrf.mxu1  ;;  %v299_v42 = vadd.f32 %v298_v49, %v193_v54 }
  0xe3   :  { %v3080_v52 = vadd.f32 %v351_v50, %v3058_v7  ;;  %v3082_v20 = vadd.f32 %v260_v17, %v192_v46  ;;  %v2316_v17 = vpop.eup %2315 }
  0xe4   :  { %vm569_vm0 = vweird.f32 %v2316_v17 }
  0xe5   :  { %3896 = vst [vmem:[#allocation27_spill] sm:$0xff] %v3080_v52  ;;  %vm570_vm3 = vmor %vm568_vm1, %vm569_vm0 }
  0xe9   :  { %v301_v55 = vpop.f32.mrf.mxu2 }
  0xea   :  { %v3084_v47 = vadd.f32 %v301_v55, %v193_v54  ;;  %v354_v57 = vpop.f32.mrf.mxu3  ;;  %v263_v58 = vpop.f32.mrf.mxu1 }
  0xeb   :  { %v3087_v60 = vadd.f32 %v354_v57, %v3058_v7  ;;  %v3089_v63 = vadd.f32 %v263_v58, %v192_v46 }
  0xed   :  { %3897 = vst [vmem:[#allocation28_spill] sm:$0xff] %v3087_v60  ;;  %v3362_v60 = vld [vmem:[#allocation9 + $0x10] sm:$0xff] }
  0xf1   :  { %v304_v23 = vpop.f32.mrf.mxu2 }
  0xf2   :  { %v3091_v0 = vadd.f32 %v304_v23, %v193_v54  ;;  %v357_v1 = vpop.f32.mrf.mxu3  ;;  %v266_v26 = vpop.f32.mrf.mxu1  ;;  %v564_v23 = vmul.f32 %v2316_v17, %v560_v41 }
  0xf3   :  { %v3094_v3 = vadd.f32 %v357_v1, %v3058_v7  ;;  %v3096_v5 = vadd.f32 %v266_v26, %v192_v46 }
  0xf4   :  { %v565_v26 = vsub.f32 1.0, %v564_v23 }
  0xf5   :  { %3898 = vst [vmem:[#allocation29_spill] sm:$0xff] %v3094_v3  ;;  %v3351_v3 = vld [vmem:[#allocation9 + $0x28] sm:$0xff] }
  0xf6   :  { %3899 = vst [vmem:[#allocation30_spill] sm:$0xff] %v3096_v5 }
  0xf9   :  { %v307_v61 = vpop.f32.mrf.mxu2 }
  0xfa   :  { %v3098_v4 = vadd.f32 %v307_v61, %v193_v54  ;;  %v360_v9 = vpop.f32.mrf.mxu3  ;;  %v269_v12 = vpop.f32.mrf.mxu1 }
  0xfb   :  { %v3101_v29 = vadd.f32 %v360_v9, %v3058_v7  ;;  %v3103_v16 = vadd.f32 %v269_v12, %v192_v46  ;;  %v566_v12 = vmul.f32 %v2316_v17, %v565_v26 }
  0xfc   :  { %3900 = vst [vmem:[#allocation31_spill] sm:$0xff] %v3098_v4 }
  0xfd   :  { %3901 = vst [vmem:[#allocation32_spill] sm:$0xff] %v3101_v29 }
  0xfe   :  { %3902 = vst [vmem:[#allocation33_spill] sm:$0xff] %v3103_v16 }
 0x101   :  { %v310_v18 = vpop.f32.mrf.mxu2 }
 0x102   :  { %v3105_v32 = vadd.f32 %v310_v18, %v193_v54  ;;  %v272_v6 = vpop.f32.mrf.mxu1  ;;  %v544_v43 = vpop.f32.mrf.mxu3 }
 0x103   :  { %v3107_v21 = vadd.f32 %v272_v6, %v192_v46 }
 0x104   :  { %3903 = vst [vmem:[#allocation34_spill] sm:$0xff] %v3105_v32 }
 0x105   :  { %3904 = vst [vmem:[#allocation35_spill] sm:$0xff] %v3107_v21 }
 0x109   :  { %v313_v8 = vpop.f32.mrf.mxu2 }
 0x10a   :  { %v3109_v38 = vadd.f32 %v313_v8, %v193_v54  ;;  %v275_v25 = vpop.f32.mrf.mxu1  ;;  %v572_v8 = vand.u32 2147483647, %v560_v41 }
 0x10b   :  { %v3111_v30 = vadd.f32 %v275_v25, %v192_v46 }
 0x10c   :  { %3905 = vst [vmem:[#allocation36_spill] sm:$0xff] %v3109_v38  ;;  %vm573_vm6 = vcmp.eq.f32.partialorder %v572_v8, 8.507059e+37 }
 0x10d   :  { %3906 = vst [vmem:[#allocation37_spill] sm:$0xff] %v3111_v30 }
 0x111   :  { %v316_v44 = vpop.f32.mrf.mxu2 }
 0x112   :  { %v3113_v51 = vadd.f32 %v316_v44, %v193_v54  ;;  %v278_v62 = vpop.f32.mrf.mxu1 }
 0x113   :  { %v3115_v10 = vadd.f32 %v278_v62, %v192_v46  ;;  %v340_v46 = vadd.f32 %v3054_v59, %v3058_v7 }
 0x114   :  { %3907 = vst [vmem:[#allocation38_spill] sm:$0xff] %v3113_v51  ;;  %v3357_v51 = vld [vmem:[#allocation9 + $0x38] sm:$0xff] }
 0x115   :  { %3908 = vst [vmem:[#allocation39_spill] sm:$0xff] %v3115_v10  ;;  %v550_v9 = vadd.f32 %v544_v43, %v340_v46  ;;  %v3341_v10 = vld [vmem:[#allocation9 + $0x48] sm:$0xff] }
 0x11a   :  { %v319_v24 = vpop.f32.mrf.mxu2  ;;  %v504_v11 = vpop.f32.mrf.mxu1 }
 0x11b   :  { %v3117_v33 = vadd.f32 %v319_v24, %v193_v54  ;;  %v548_v36 = vadd.f32 %v504_v11, %v258_v48  ;;  %v567_v54 = vadd.f32 %v2316_v17, %v566_v12  ;;  %v3137_v12 = vld [vmem:[#allocation9 + $0x1a0] sm:$0xff] }
 0x11d   :  { %3909 = vst [vmem:[#allocation40_spill] sm:$0xff] %v3117_v33  ;;  %v2262_v40 = vmul.f32 -1.442695, %v548_v36  ;;  %v571_v7 = vsel %vm570_vm3, %v2316_v17, %v567_v54  ;;  %v3149_v54 = vld [vmem:[#allocation9 + $0x120] sm:$0xff] }
 0x11e   :  { %v576_v36 = vsel %vm573_vm6, %v575_v19, %v571_v7  ;;  %v3163_v7 = vld [vmem:[#allocation9 + $0xa0] sm:$0xff] }
 0x11f   :  { %2317 = vpow2.f32 %v2262_v40  ;;  %v3166_v19 = vld [vmem:[#allocation9 + $0x80] sm:$0xff] }
 0x122   :  { %v524_v50 = vpop.f32.mrf.mxu2 }
 0x123   :  { %v549_v55 = vadd.f32 %v524_v50, %v299_v42 }
 0x125   :  { %v2263_v57 = vmul.f32 -1.442695, %v549_v55  ;;  %v2318_v58 = vpop.eup %2317 }
 0x126   :  { %v561_v1 = vadd.f32 1.0, %v2318_v58 }
 0x127   :  { %2319 = vpow2.f32 %v2263_v57 }
 0x128   :  { %2321 = vrcp.f32 %v561_v1  ;;  %v589_v35 = vand.u32 2147483648, %v561_v1  ;;  %v587_v28 = vand.u32 2147483647, %v561_v1  ;;  %vm583_vm4 = vweird.f32 %v561_v1 }
 0x12a   :  { %v590_v48 = vor.u32 1.1754944e-38, %v589_v35  ;;  %vm588_vm7 = vcmp.eq.f32.partialorder %v587_v28, 8.507059e+37 }
 0x12d   :  { %v2320_v61 = vpop.eup %2319 }
 0x12e   :  { %v562_v18 = vadd.f32 1.0, %v2320_v61  ;;  %v2322_v6 = vpop.eup %2321 }
 0x12f   :  { %v579_v49 = vmul.f32 %v2322_v6, %v561_v1  ;;  %vm584_vm2 = vweird.f32 %v2322_v6 }
 0x130   :  { %2323 = vrcp.f32 %v562_v18  ;;  %vm585_vm5 = vmor %vm583_vm4, %vm584_vm2  ;;  %v604_v58 = vand.u32 2147483648, %v562_v18  ;;  %vm598_vm9 = vweird.f32 %v562_v18  ;;  %v602_v23 = vand.u32 2147483647, %v562_v18 }
 0x131   :  { %2325 = vtanh.f32 %v550_v9  ;;  %v580_v13 = vsub.f32 1.0, %v579_v49  ;;  %v3134_v9 = vld [vmem:[#allocation9 + $0x1c0] sm:$0xff] }
 0x132   :  { %v605_v26 = vor.u32 1.1754944e-38, %v604_v58  ;;  %vm603_vm11 = vcmp.eq.f32.partialorder %v602_v23, 8.507059e+37  ;;  %v3146_v49 = vld [vmem:[#allocation9 + $0x140] sm:$0xff] }
 0x133   :  { %v581_v25 = vmul.f32 %v2322_v6, %v580_v13  ;;  %v3152_v13 = vld [vmem:[#allocation9 + $0x100] sm:$0xff] }
 0x135   :  { %v582_v44 = vadd.f32 %v2322_v6, %v581_v25  ;;  %v3158_v25 = vld [vmem:[#allocation9 + $0xc0] sm:$0xff] }
 0x136   :  { %v2324_v59 = vpop.eup %2323 }
 0x137   :  { %v2326_v62 = vpop.eup %2325  ;;  %v594_v24 = vmul.f32 %v2324_v59, %v562_v18  ;;  %v586_v11 = vsel %vm585_vm5, %v2322_v6, %v582_v44  ;;  %vm599_vm8 = vweird.f32 %v2324_v59  ;;  %v3140_v18 = vld [vmem:[#allocation9 + $0x180] sm:$0xff] }
 0x138   :  { %v591_v40 = vsel %vm588_vm7, %v590_v48, %v586_v11  ;;  %v610_v41 = vmul.f32 %v2326_v62, %v576_v36  ;;  %vm600_vm10 = vmor %vm598_vm9, %vm599_vm8  ;;  %v3143_v6 = vld [vmem:[#allocation9 + $0x160] sm:$0xff] }
 0x139   :  { %v595_v42 = vsub.f32 1.0, %v594_v24  ;;  %v609_v50 = vmul.f32 %v591_v40, %v2747_v53  ;;  %v3131_v53 = vld [vmem:[#allocation9 + $0x1e0] sm:$0xff] }
 0x13a   :  { %906 = vmatpush.msra.mxu0 %v3131_v53  ;;  %v3168_v48 = vld [vmem:[#allocation9 + $0x60] sm:$0xff] }
 0x13b   :  { %v596_v55 = vmul.f32 %v2324_v59, %v595_v42  ;;  %v3122_v57 = vadd.f32 %v610_v41, %v609_v50  ;;  %v3171_v24 = vld [vmem:[#allocation9 + $0x40] sm:$0xff] }
 0x13c   :  { %907 = vmatpush.msra.mxu0 %v3134_v9  ;;  %v3175_v11 = vld [vmem:[#allocation9 + $0x20] sm:$0xff] }
 0x13d   :  { %v597_v17 = vadd.f32 %v2324_v59, %v596_v55  ;;  %2327 = vtanh.f32 %v3122_v57  ;;  %v3178_v40 = vld [vmem:[#allocation9] sm:$0xff] }
 0x13e   :  { %908 = vmatpush.msra.mxu0 %v3137_v12 }
 0x13f   :  { %v601_v1 = vsel %vm600_vm10, %v2324_v59, %v597_v17 }
 0x140   :  { %v606_v46 = vsel %vm603_vm11, %v605_v26, %v601_v1  ;;  %909 = vmatpush.msra.mxu0 %v3140_v18 }
 0x142   :  { %910 = vmatpush.msra.mxu0 %v3143_v6 }
 0x143   :  { %v2328_v43 = vpop.eup %2327 }
 0x144   :  { %v3125_v61 = vmul.f32 %v2328_v43, %v606_v46  ;;  %911 = vmatpush.msra.mxu0 %v3146_v49 }
 0x146   :  { %3910 = vst [vmem:[#allocation41_spill] sm:$0xff] %v3125_v61  ;;  %702 = vmatmul.f32.vlgmr.msrb.gmra.mxu0 %v3125_v61  ;;  %722 = vmatmul.f32.vlgmr.msrb.gmra.mxu1 %v3125_v61 }
 0x147   :  { %742 = vmatmul.f32.vlgmr.msrb.gmra.mxu2 %v3125_v61  ;;  %762 = vmatmul.f32.vlgmr.msra.gmra.mxu3 %v3125_v61 }
 0x148   :  { %912 = vmatpush.msra.mxu0 %v3149_v54 }
 0x14a   :  { %913 = vmatpush.msra.mxu0 %v3152_v13 }
 0x14c   :  { %914 = vmatpush.msra.mxu0 %v3155_v22 }
 0x14e   :  { %915 = vmatpush.msra.mxu0 %v3158_v25 }
 0x150   :  { %916 = vmatpush.msra.mxu0 %v3163_v7 }
 0x152   :  { %917 = vmatpush.msra.mxu0 %v3166_v19 }
 0x154   :  { %918 = vmatpush.msra.mxu0 %v3168_v48 }
 0x156   :  { %919 = vmatpush.msra.mxu0 %v3171_v24 }
 0x158   :  { %920 = vmatpush.msra.mxu0 %v3175_v11 }
 0x15a   :  { %921 = vmatpush.msra.mxu0 %v3178_v40 }
 0x15c   :  { %1126 = vmatpush.msrb.mxu0 %v3131_v53 }
 0x15e   :  { %1127 = vmatpush.msrb.mxu0 %v3134_v9 }
 0x160   :  { %1128 = vmatpush.msrb.mxu0 %v3137_v12 }
 0x162   :  { %1129 = vmatpush.msrb.mxu0 %v3140_v18 }
 0x164   :  { %1130 = vmatpush.msrb.mxu0 %v3143_v6 }
 0x166   :  { %1131 = vmatpush.msrb.mxu0 %v3146_v49 }
 0x168   :  { %1132 = vmatpush.msrb.mxu0 %v3149_v54 }
 0x16a   :  { %1133 = vmatpush.msrb.mxu0 %v3152_v13 }
 0x16c   :  { %1134 = vmatpush.msrb.mxu0 %v3155_v22 }
 0x16e   :  { %1135 = vmatpush.msrb.mxu0 %v3158_v25 }
 0x170   :  { %1136 = vmatpush.msrb.mxu0 %v3163_v7 }
 0x172   :  { %1137 = vmatpush.msrb.mxu0 %v3166_v19 }
 0x174   :  { %1138 = vmatpush.msrb.mxu0 %v3168_v48 }
 0x176   :  { %1139 = vmatpush.msrb.mxu0 %v3171_v24 }
 0x178   :  { %1140 = vmatpush.msrb.mxu0 %v3175_v11 }
 0x17a   :  { %1141 = vmatpush.msrb.mxu0 %v3178_v40 }
 0x1c3   :  { %v703_v35 = vpop.f32.mrf.mxu0  ;;  %v723_v8 = vpop.f32.mrf.mxu1 }
 0x1c4   :  { %v766_v28 = vadd.f32 %v703_v35, %v3056_v2  ;;  %v767_v59 = vadd.f32 %v723_v8, %v3082_v20 }
 0x1c6   :  { %v2264_v44 = vmul.f32 -1.442695, %v766_v28  ;;  %v2265_v62 = vmul.f32 -1.442695, %v767_v59 }
 0x1c8   :  { %2329 = vpow2.f32 %v2264_v44 }
 0x1c9   :  { %2331 = vpow2.f32 %v2265_v62 }
 0x1ca   :  { %v743_v2 = vpop.f32.mrf.mxu2 }
 0x1cb   :  { %v768_v20 = vadd.f32 %v743_v2, %v3084_v47  ;;  %v763_v47 = vpop.f32.mrf.mxu3 }
 0x1cc   :  { %v769_v1 = vadd.f32 %v763_v47, %v3063_v27 }
 0x1cd   :  { %v2266_v36 = vmul.f32 -1.442695, %v768_v20 }
 0x1ce   :  { %v2330_v42 = vpop.eup %2329 }
 0x1cf   :  { %v2332_v41 = vpop.eup %2331  ;;  %v779_v50 = vadd.f32 1.0, %v2330_v42  ;;  %2333 = vpow2.f32 %v2266_v36 }
 0x1d0   :  { %v780_v55 = vadd.f32 1.0, %v2332_v41 }
 0x1d1   :  { %2335 = vrcp.f32 %v779_v50  ;;  %v793_v28 = vand.u32 2147483648, %v779_v50  ;;  %v791_v62 = vand.u32 2147483647, %v779_v50  ;;  %vm787_vm14 = vweird.f32 %v779_v50 }
 0x1d2   :  { %2337 = vrcp.f32 %v780_v55  ;;  %v808_v59 = vand.u32 2147483648, %v780_v55  ;;  %v806_v27 = vand.u32 2147483647, %v780_v55  ;;  %vm802_vm15 = vweird.f32 %v780_v55 }
 0x1d3   :  { %v794_v41 = vor.u32 1.1754944e-38, %v793_v28  ;;  %vm792_vm2 = vcmp.eq.f32.partialorder %v791_v62, 8.507059e+37 }
 0x1d4   :  { %vm807_vm3 = vcmp.eq.f32.partialorder %v806_v27, 8.507059e+37 }
 0x1d5   :  { %v2334_v17 = vpop.eup %2333 }
 0x1d6   :  { %v781_v58 = vadd.f32 1.0, %v2334_v17  ;;  %v809_v17 = vor.u32 1.1754944e-38, %v808_v59 }
 0x1d7   :  { %v2336_v23 = vpop.eup %2335 }
 0x1d8   :  { %v2338_v26 = vpop.eup %2337  ;;  %v783_v43 = vmul.f32 %v2336_v23, %v779_v50  ;;  %2339 = vrcp.f32 %v781_v58  ;;  %vm788_vm12 = vweird.f32 %v2336_v23  ;;  %v823_v59 = vand.u32 2147483648, %v781_v58 }
 0x1d9   :  { %v798_v46 = vmul.f32 %v2338_v26, %v780_v55  ;;  %2341 = vtanh.f32 %v769_v1  ;;  %vm803_vm13 = vweird.f32 %v2338_v26  ;;  %vm789_vm0 = vmor %vm787_vm14, %vm788_vm12  ;;  %vm817_vm5 = vweird.f32 %v781_v58 }
 0x1da   :  { %v784_v35 = vsub.f32 1.0, %v783_v43  ;;  %vm804_vm1 = vmor %vm802_vm15, %vm803_vm13 }
 0x1db   :  { %v799_v8 = vsub.f32 1.0, %v798_v46 }
 0x1dc   :  { %v785_v44 = vmul.f32 %v2336_v23, %v784_v35 }
 0x1dd   :  { %v800_v2 = vmul.f32 %v2338_v26, %v799_v8 }
 0x1de   :  { %v2340_v20 = vpop.eup %2339  ;;  %v786_v36 = vadd.f32 %v2336_v23, %v785_v44 }
 0x1df   :  { %v813_v42 = vmul.f32 %v2340_v20, %v781_v58  ;;  %v801_v47 = vadd.f32 %v2338_v26, %v800_v2  ;;  %v2342_v43 = vpop.eup %2341  ;;  %vm818_vm4 = vweird.f32 %v2340_v20 }
 0x1e0   :  { %v790_v1 = vsel %vm789_vm0, %v2336_v23, %v786_v36  ;;  %vm819_vm6 = vmor %vm817_vm5, %vm818_vm4  ;;  %v3279_v36 = vld [vmem:[#allocation9 + $0x128] sm:$0xff] }
 0x1e1   :  { %v814_v46 = vsub.f32 1.0, %v813_v42  ;;  %v795_v35 = vsel %vm792_vm2, %v794_v41, %v790_v1  ;;  %v805_v8 = vsel %vm804_vm1, %v2338_v26, %v801_v47  ;;  %v821_v26 = vand.u32 2147483647, %v781_v58  ;;  %v3272_v58 = vld [vmem:[#allocation9 + $0x150] sm:$0xff]  ;;  %3914 = vst [vmem:[#allocation45_spill] sm:$0xff] %v3279_v36  ;;  %v3283_v41 = vld [vmem:[#allocation9 + $0x138] sm:$0xff] }
 0x1e2   :  { %v810_v44 = vsel %vm807_vm3, %v809_v17, %v805_v8  ;;  %v829_v50 = vmul.f32 %v2342_v43, %v795_v35  ;;  %3912 = vst [vmem:[#allocation43_spill] sm:$0xff] %v3272_v58  ;;  %v3281_v42 = vld [vmem:[#allocation9 + $0x130] sm:$0xff]  ;;  %v3288_v47 = vld [vmem:[#allocation9 + $0x108] sm:$0xff]  ;;  %v3292_v1 = vld [vmem:[#allocation9 + $0x118] sm:$0xff] }
 0x1e3   :  { %v815_v55 = vmul.f32 %v2340_v20, %v814_v46  ;;  %v828_v29 = vmul.f32 %v810_v44, %v3122_v57  ;;  %v824_v57 = vor.u32 1.1754944e-38, %v823_v59  ;;  %vm822_vm7 = vcmp.eq.f32.partialorder %v821_v26, 8.507059e+37  ;;  %3915 = vst [vmem:[#allocation46_spill] sm:$0xff] %v3281_v42  ;;  %v3290_v17 = vld [vmem:[#allocation9 + $0x110] sm:$0xff]  ;;  %v3297_v43 = vld [vmem:[#allocation9 + $0xe8] sm:$0xff]  ;;  %v3301_v35 = vld [vmem:[#allocation9 + $0xf8] sm:$0xff] }
 0x1e4   :  { %3916 = vst [vmem:[#allocation47_spill] sm:$0xff] %v3283_v41  ;;  %v3299_v46 = vld [vmem:[#allocation9 + $0xf0] sm:$0xff] }
 0x1e5   :  { %v3194_v28 = vadd.f32 %v829_v50, %v828_v29  ;;  %v816_v23 = vadd.f32 %v2340_v20, %v815_v55  ;;  %v3306_v50 = vld [vmem:[#allocation9 + $0xc8] sm:$0xff]  ;;  %v3308_v55 = vld [vmem:[#allocation9 + $0xd0] sm:$0xff] }
 0x1e7   :  { %2343 = vtanh.f32 %v3194_v28  ;;  %v820_v62 = vsel %vm819_vm6, %v2340_v20, %v816_v23  ;;  %v3274_v20 = vld [vmem:[#allocation9 + $0x158] sm:$0xff] }
 0x1e8   :  { %v825_v2 = vsel %vm822_vm7, %v824_v57, %v820_v62  ;;  %3913 = vst [vmem:[#allocation44_spill] sm:$0xff] %v3274_v20  ;;  %v3310_v23 = vld [vmem:[#allocation9 + $0xd8] sm:$0xff]  ;;  %v3317_v62 = vld [vmem:[#allocation9 + $0xa8] sm:$0xff]  ;;  %v3319_v57 = vld [vmem:[#allocation9 + $0xb0] sm:$0xff] }
 0x1ed   :  { %v2344_v29 = vpop.eup %2343 }
 0x1ee   :  { %v3202_v27 = vmul.f32 %v2344_v29, %v825_v2  ;;  %v3321_v29 = vld [vmem:[#allocation9 + $0xb8] sm:$0xff] }
 0x1f0   :  { %3911 = vst [vmem:[#allocation42_spill] sm:$0xff] %v3202_v27  ;;  %922 = vmatmul.f32.vlgmr.msra.gmra.mxu0 %v3202_v27  ;;  %942 = vmatmul.f32.vlgmr.msra.gmra.mxu1 %v3202_v27 }
 0x1f1   :  { %962 = vmatmul.f32.vlgmr.msra.gmra.mxu2 %v3202_v27  ;;  %982 = vmatmul.f32.vlgmr.msrb.gmra.mxu3 %v3202_v27 }
 0x1f2   :  { %1346 = vmatpush.msra.mxu0 %v3131_v53  ;;  %v3225_v53 = vld [vmem:[#allocation9 + $0x1e8] sm:$0xff] }
 0x1f3   :  { %1146 = vmatpush.msrb.mxu1 %v3225_v53 }
 0x1f4   :  { %1347 = vmatpush.msra.mxu0 %v3134_v9  ;;  %v3227_v9 = vld [vmem:[#allocation9 + $0x1f0] sm:$0xff] }
 0x1f5   :  { %1166 = vmatpush.msrb.mxu2 %v3227_v9 }
 0x1f6   :  { %1348 = vmatpush.msra.mxu0 %v3137_v12  ;;  %v3229_v12 = vld [vmem:[#allocation9 + $0x1f8] sm:$0xff] }
 0x1f7   :  { %1186 = vmatpush.msra.mxu3 %v3229_v12 }
 0x1f8   :  { %1349 = vmatpush.msra.mxu0 %v3140_v18  ;;  %v3234_v18 = vld [vmem:[#allocation9 + $0x1c8] sm:$0xff] }
 0x1f9   :  { %1147 = vmatpush.msrb.mxu1 %v3234_v18 }
 0x1fa   :  { %1350 = vmatpush.msra.mxu0 %v3143_v6  ;;  %v3236_v6 = vld [vmem:[#allocation9 + $0x1d0] sm:$0xff] }
 0x1fb   :  { %1167 = vmatpush.msrb.mxu2 %v3236_v6 }
 0x1fc   :  { %1351 = vmatpush.msra.mxu0 %v3146_v49  ;;  %v3238_v49 = vld [vmem:[#allocation9 + $0x1d8] sm:$0xff] }
 0x1fd   :  { %1187 = vmatpush.msra.mxu3 %v3238_v49 }
 0x1fe   :  { %1352 = vmatpush.msra.mxu0 %v3149_v54  ;;  %v3243_v54 = vld [vmem:[#allocation9 + $0x1a8] sm:$0xff] }
 0x1ff   :  { %1148 = vmatpush.msrb.mxu1 %v3243_v54 }
 0x200   :  { %1353 = vmatpush.msra.mxu0 %v3152_v13  ;;  %v3245_v13 = vld [vmem:[#allocation9 + $0x1b0] sm:$0xff] }
 0x201   :  { %1168 = vmatpush.msrb.mxu2 %v3245_v13 }
 0x202   :  { %1354 = vmatpush.msra.mxu0 %v3155_v22  ;;  %v3247_v22 = vld [vmem:[#allocation9 + $0x1b8] sm:$0xff] }
 0x203   :  { %1188 = vmatpush.msra.mxu3 %v3247_v22 }
 0x204   :  { %1355 = vmatpush.msra.mxu0 %v3158_v25  ;;  %v3252_v25 = vld [vmem:[#allocation9 + $0x188] sm:$0xff] }
 0x205   :  { %1149 = vmatpush.msrb.mxu1 %v3252_v25 }
 0x206   :  { %1356 = vmatpush.msra.mxu0 %v3163_v7  ;;  %v3254_v7 = vld [vmem:[#allocation9 + $0x190] sm:$0xff] }
 0x207   :  { %1169 = vmatpush.msrb.mxu2 %v3254_v7 }
 0x208   :  { %1357 = vmatpush.msra.mxu0 %v3166_v19  ;;  %v3256_v19 = vld [vmem:[#allocation9 + $0x198] sm:$0xff] }
 0x209   :  { %1189 = vmatpush.msra.mxu3 %v3256_v19 }
 0x20a   :  { %1358 = vmatpush.msra.mxu0 %v3168_v48  ;;  %v3261_v48 = vld [vmem:[#allocation9 + $0x168] sm:$0xff] }
 0x20b   :  { %1150 = vmatpush.msrb.mxu1 %v3261_v48 }
 0x20c   :  { %1359 = vmatpush.msra.mxu0 %v3171_v24  ;;  %v3263_v24 = vld [vmem:[#allocation9 + $0x170] sm:$0xff] }
 0x20d   :  { %1170 = vmatpush.msrb.mxu2 %v3263_v24 }
 0x20e   :  { %1360 = vmatpush.msra.mxu0 %v3175_v11  ;;  %v3265_v11 = vld [vmem:[#allocation9 + $0x178] sm:$0xff] }
 0x20f   :  { %1190 = vmatpush.msra.mxu3 %v3265_v11  ;;  %1171 = vmatpush.msrb.mxu2 %v3272_v58 }
 0x210   :  { %1361 = vmatpush.msra.mxu0 %v3178_v40  ;;  %v3270_v40 = vld [vmem:[#allocation9 + $0x148] sm:$0xff] }
 0x211   :  { %1151 = vmatpush.msrb.mxu1 %v3270_v40  ;;  %1191 = vmatpush.msra.mxu3 %v3274_v20 }
 0x212   :  { %1172 = vmatpush.msrb.mxu2 %v3281_v42 }
 0x213   :  { %1152 = vmatpush.msrb.mxu1 %v3279_v36  ;;  %1192 = vmatpush.msra.mxu3 %v3283_v41 }
 0x214   :  { %1173 = vmatpush.msrb.mxu2 %v3290_v17 }
 0x215   :  { %1153 = vmatpush.msrb.mxu1 %v3288_v47  ;;  %1193 = vmatpush.msra.mxu3 %v3292_v1 }
 0x216   :  { %1174 = vmatpush.msrb.mxu2 %v3299_v46 }
 0x217   :  { %1154 = vmatpush.msrb.mxu1 %v3297_v43  ;;  %1194 = vmatpush.msra.mxu3 %v3301_v35 }
 0x218   :  { %1175 = vmatpush.msrb.mxu2 %v3308_v55 }
 0x219   :  { %1155 = vmatpush.msrb.mxu1 %v3306_v50  ;;  %1195 = vmatpush.msra.mxu3 %v3310_v23 }
 0x21a   :  { %1176 = vmatpush.msrb.mxu2 %v3319_v57 }
 0x21b   :  { %1156 = vmatpush.msrb.mxu1 %v3317_v62  ;;  %1196 = vmatpush.msra.mxu3 %v3321_v29 }
 0x26d   :  { %v923_v8 = vpop.f32.mrf.mxu0  ;;  %v943_v44 = vpop.f32.mrf.mxu1 }
 0x26e   :  { %v986_v59 = vadd.f32 %v923_v8, %v3065_v31  ;;  %v987_v26 = vadd.f32 %v943_v44, %v3089_v63  ;;  %v3326_v31 = vld [vmem:[#allocation9 + $0x88] sm:$0xff]  ;;  %v3328_v63 = vld [vmem:[#allocation9 + $0x90] sm:$0xff]  ;;  %v3330_v8 = vld [vmem:[#allocation9 + $0x98] sm:$0xff] }
 0x26f   :  { %1157 = vmatpush.msrb.mxu1 %v3326_v31  ;;  %1177 = vmatpush.msrb.mxu2 %v3328_v63  ;;  %v3334_v44 = vld [vmem:[#allocation9 + $0x68] sm:$0xff] }
 0x270   :  { %v2267_v2 = vmul.f32 -1.442695, %v986_v59  ;;  %v2268_v33 = vmul.f32 -1.442695, %v987_v26  ;;  %v3336_v59 = vld [vmem:[#allocation9 + $0x70] sm:$0xff]  ;;  %v3338_v26 = vld [vmem:[#allocation9 + $0x78] sm:$0xff]  ;;  %1197 = vmatpush.msra.mxu3 %v3330_v8 }
 0x271   :  { %1158 = vmatpush.msrb.mxu1 %v3334_v44  ;;  %1178 = vmatpush.msrb.mxu2 %v3336_v59 }
 0x272   :  { %2345 = vpow2.f32 %v2267_v2  ;;  %v3347_v2 = vld [vmem:[#allocation9 + $0x58] sm:$0xff]  ;;  %1198 = vmatpush.msra.mxu3 %v3338_v26 }
 0x273   :  { %2347 = vpow2.f32 %v2268_v33  ;;  %v3353_v33 = vld [vmem:[#allocation9 + $0x30] sm:$0xff]  ;;  %1159 = vmatpush.msrb.mxu1 %v3341_v10  ;;  %1179 = vmatpush.msrb.mxu2 %v3343_v14 }
 0x274   :  { %v963_v27 = vpop.f32.mrf.mxu2  ;;  %1199 = vmatpush.msra.mxu3 %v3347_v2 }
 0x275   :  { %v988_v61 = vadd.f32 %v963_v27, %v3091_v0  ;;  %1160 = vmatpush.msrb.mxu1 %v3351_v3  ;;  %1180 = vmatpush.msrb.mxu2 %v3353_v33  ;;  %v3366_v27 = vld [vmem:[#allocation9 + $0x18] sm:$0xff] }
 0x276   :  { %1200 = vmatpush.msra.mxu3 %v3357_v51 }
 0x277   :  { %v2269_v30 = vmul.f32 -1.442695, %v988_v61  ;;  %1161 = vmatpush.msrb.mxu1 %v3360_v34  ;;  %1181 = vmatpush.msrb.mxu2 %v3362_v60 }
 0x278   :  { %v2346_v0 = vpop.eup %2345  ;;  %1201 = vmatpush.msra.mxu3 %v3366_v27 }
 0x279   :  { %v2348_v38 = vpop.eup %2347  ;;  %v3368_v21 = vadd.f32 1.0, %v2346_v0  ;;  %2349 = vpow2.f32 %v2269_v30  ;;  %1366 = vmatpush.msra.mxu1 %v3225_v53  ;;  %1386 = vmatpush.msra.mxu2 %v3227_v9 }
 0x27a   :  { %v3371_v61 = vadd.f32 1.0, %v2348_v38  ;;  %1406 = vmatpush.msrb.mxu3 %v3229_v12  ;;  %v983_v38 = vpop.f32.mrf.mxu3 }
 0x27b   :  { %2351 = vrcp.f32 %v3368_v21  ;;  %1367 = vmatpush.msra.mxu1 %v3234_v18  ;;  %1387 = vmatpush.msra.mxu2 %v3236_v6  ;;  %v989_v52 = vadd.f32 %v983_v38, %v3070_v37  ;;  %v1013_v38 = vand.u32 2147483648, %v3368_v21  ;;  %v1011_v5 = vand.u32 2147483647, %v3368_v21 }
 0x27c   :  { %2353 = vrcp.f32 %v3371_v61  ;;  %1407 = vmatpush.msrb.mxu3 %v3238_v49  ;;  %v1028_v45 = vand.u32 2147483648, %v3371_v61  ;;  %v1026_v39 = vand.u32 2147483647, %v3371_v61  ;;  %vm1007_vm10 = vweird.f32 %v3368_v21 }
 0x27d   :  { %1368 = vmatpush.msra.mxu1 %v3243_v54  ;;  %1388 = vmatpush.msra.mxu2 %v3245_v13  ;;  %vm1022_vm11 = vweird.f32 %v3371_v61  ;;  %vm1012_vm14 = vcmp.eq.f32.partialorder %v1011_v5, 8.507059e+37 }
 0x27e   :  { %1408 = vmatpush.msrb.mxu3 %v3247_v22  ;;  %vm1027_vm15 = vcmp.eq.f32.partialorder %v1026_v39, 8.507059e+37 }
 0x27f   :  { %v2350_v30 = vpop.eup %2349  ;;  %1369 = vmatpush.msra.mxu1 %v3252_v25  ;;  %1389 = vmatpush.msra.mxu2 %v3254_v7 }
 0x280   :  { %v3385_v0 = vadd.f32 1.0, %v2350_v30  ;;  %1409 = vmatpush.msrb.mxu3 %v3256_v19 }
 0x281   :  { %v2352_v15 = vpop.eup %2351  ;;  %1370 = vmatpush.msra.mxu1 %v3261_v48  ;;  %1390 = vmatpush.msra.mxu2 %v3263_v24 }
 0x282   :  { %v2354_v32 = vpop.eup %2353  ;;  %v1003_v16 = vmul.f32 %v2352_v15, %v3368_v21  ;;  %2355 = vrcp.f32 %v3385_v0  ;;  %1410 = vmatpush.msrb.mxu3 %v3265_v11  ;;  %vm1008_vm8 = vweird.f32 %v2352_v15  ;;  %vm1037_vm1 = vweird.f32 %v3385_v0 }
 0x283   :  { %v1018_v30 = vmul.f32 %v2354_v32, %v3371_v61  ;;  %2357 = vtanh.f32 %v989_v52  ;;  %1371 = vmatpush.msra.mxu1 %v3270_v40  ;;  %1391 = vmatpush.msra.mxu2 %v3272_v58  ;;  %vm1023_vm9 = vweird.f32 %v2354_v32  ;;  %vm1009_vm12 = vmor %vm1007_vm10, %vm1008_vm8 }
 0x284   :  { %v1004_v56 = vsub.f32 1.0, %v1003_v16  ;;  %1411 = vmatpush.msrb.mxu3 %v3274_v20  ;;  %vm1024_vm13 = vmor %vm1022_vm11, %vm1023_vm9 }
 0x285   :  { %v1019_v37 = vsub.f32 1.0, %v1018_v30  ;;  %1372 = vmatpush.msra.mxu1 %v3279_v36  ;;  %1392 = vmatpush.msra.mxu2 %v3281_v42  ;;  %v1029_v36 = vor.u32 1.1754944e-38, %v1028_v45 }
 0x286   :  { %v1005_v4 = vmul.f32 %v2352_v15, %v1004_v56  ;;  %1412 = vmatpush.msrb.mxu3 %v3283_v41 }
 0x287   :  { %v1020_v16 = vmul.f32 %v2354_v32, %v1019_v37  ;;  %v1014_v37 = vor.u32 1.1754944e-38, %v1013_v38  ;;  %1373 = vmatpush.msra.mxu1 %v3288_v47  ;;  %1393 = vmatpush.msra.mxu2 %v3290_v17 }
 0x288   :  { %v2356_v30 = vpop.eup %2355  ;;  %v1006_v52 = vadd.f32 %v2352_v15, %v1005_v4  ;;  %1413 = vmatpush.msrb.mxu3 %v3292_v1 }
 0x289   :  { %v1033_v56 = vmul.f32 %v2356_v30, %v3385_v0  ;;  %v1021_v20 = vadd.f32 %v2354_v32, %v1020_v16  ;;  %v2358_v4 = vpop.eup %2357  ;;  %1374 = vmatpush.msra.mxu1 %v3297_v43  ;;  %1394 = vmatpush.msra.mxu2 %v3299_v46  ;;  %vm1038_vm0 = vweird.f32 %v2356_v30 }
 0x28a   :  { %v1010_v58 = vsel %vm1009_vm12, %v2352_v15, %v1006_v52  ;;  %1414 = vmatpush.msrb.mxu3 %v3301_v35  ;;  %vm1039_vm2 = vmor %vm1037_vm1, %vm1038_vm0 }
 0x28b   :  { %v1034_v21 = vsub.f32 1.0, %v1033_v56  ;;  %v1015_v41 = vsel %vm1012_vm14, %v1014_v37, %v1010_v58  ;;  %v1025_v61 = vsel %vm1024_vm13, %v2354_v32, %v1021_v20  ;;  %1375 = vmatpush.msra.mxu1 %v3306_v50  ;;  %1395 = vmatpush.msra.mxu2 %v3308_v55  ;;  %v1043_v32 = vand.u32 2147483648, %v3385_v0 }
 0x28c   :  { %v1030_v42 = vsel %vm1027_vm15, %v1029_v36, %v1025_v61  ;;  %v1049_v38 = vmul.f32 %v2358_v4, %v1015_v41  ;;  %1415 = vmatpush.msrb.mxu3 %v3310_v23 }
 0x28d   :  { %v1035_v45 = vmul.f32 %v2356_v30, %v1034_v21  ;;  %v1048_v15 = vmul.f32 %v1030_v42, %v3194_v28  ;;  %1376 = vmatpush.msra.mxu1 %v3317_v62  ;;  %1396 = vmatpush.msra.mxu2 %v3319_v57  ;;  %v1041_v28 = vand.u32 2147483647, %v3385_v0  ;;  %v1044_v20 = vor.u32 1.1754944e-38, %v1043_v32 }
 0x28e   :  { %1416 = vmatpush.msrb.mxu3 %v3321_v29 }
 0x28f   :  { %v3423_v5 = vadd.f32 %v1049_v38, %v1048_v15  ;;  %v1036_v39 = vadd.f32 %v2356_v30, %v1035_v45  ;;  %1377 = vmatpush.msra.mxu1 %v3326_v31  ;;  %1397 = vmatpush.msra.mxu2 %v3328_v63  ;;  %vm1042_vm3 = vcmp.eq.f32.partialorder %v1041_v28, 8.507059e+37 }
 0x290   :  { %1417 = vmatpush.msrb.mxu3 %v3330_v8 }
 0x291   :  { %2359 = vtanh.f32 %v3423_v5  ;;  %1378 = vmatpush.msra.mxu1 %v3334_v44  ;;  %v1040_v58 = vsel %vm1039_vm2, %v2356_v30, %v1036_v39  ;;  %1398 = vmatpush.msra.mxu2 %v3336_v59 }
 0x292   :  { %1418 = vmatpush.msrb.mxu3 %v3338_v26  ;;  %v1045_v42 = vsel %vm1042_vm3, %v1044_v20, %v1040_v58 }
 0x293   :  { %1379 = vmatpush.msra.mxu1 %v3341_v10  ;;  %1399 = vmatpush.msra.mxu2 %v3343_v14 }
 0x294   :  { %1419 = vmatpush.msrb.mxu3 %v3347_v2 }
 0x295   :  { %1380 = vmatpush.msra.mxu1 %v3351_v3  ;;  %1400 = vmatpush.msra.mxu2 %v3353_v33 }
 0x296   :  { %1420 = vmatpush.msrb.mxu3 %v3357_v51 }
 0x297   :  { %v2360_v36 = vpop.eup %2359  ;;  %1381 = vmatpush.msra.mxu1 %v3360_v34  ;;  %1401 = vmatpush.msra.mxu2 %v3362_v60 }
 0x298   :  { %v3442_v41 = vmul.f32 %v2360_v36, %v1045_v42  ;;  %1421 = vmatpush.msrb.mxu3 %v3366_v27 }
 0x29a   :  { %1142 = vmatmul.f32.vlgmr.msrb.gmra.mxu0 %v3442_v41  ;;  %1162 = vmatmul.f32.vlgmr.msrb.gmra.mxu1 %v3442_v41 }
 0x29b   :  { %1182 = vmatmul.f32.vlgmr.msrb.gmra.mxu2 %v3442_v41  ;;  %1202 = vmatmul.f32.vlgmr.msra.gmra.mxu3 %v3442_v41 }
 0x29c   :  { %1586 = vmatpush.msrb.mxu1 %v3225_v53  ;;  %1606 = vmatpush.msrb.mxu2 %v3227_v9  ;;  %v3917_v53 = vld [vmem:[#allocation43_spill] sm:$0xff]  ;;  %v3918_v9 = vld [vmem:[#allocation44_spill] sm:$0xff] }
 0x29d   :  { %1626 = vmatpush.msra.mxu3 %v3229_v12  ;;  %v3919_v12 = vld [vmem:[#allocation45_spill] sm:$0xff] }
 0x29e   :  { %1587 = vmatpush.msrb.mxu1 %v3234_v18  ;;  %1607 = vmatpush.msrb.mxu2 %v3236_v6  ;;  %v3920_v18 = vld [vmem:[#allocation46_spill] sm:$0xff]  ;;  %v3921_v6 = vld [vmem:[#allocation47_spill] sm:$0xff] }
 0x29f   :  { %1627 = vmatpush.msra.mxu3 %v3238_v49 }
 0x2a0   :  { %1588 = vmatpush.msrb.mxu1 %v3243_v54  ;;  %1608 = vmatpush.msrb.mxu2 %v3245_v13  ;;  %v3922_v13 = vld [vmem:[#allocation24_spill] sm:$0xff] }
 0x2a1   :  { %1628 = vmatpush.msra.mxu3 %v3247_v22  ;;  %v3923_v22 = vld [vmem:[#allocation30_spill] sm:$0xff] }
 0x2a2   :  { %1589 = vmatpush.msrb.mxu1 %v3252_v25  ;;  %1609 = vmatpush.msrb.mxu2 %v3254_v7 }
 0x2a3   :  { %1629 = vmatpush.msra.mxu3 %v3256_v19  ;;  %v3924_v19 = vld [vmem:[#allocation31_spill] sm:$0xff] }
 0x2a4   :  { %1590 = vmatpush.msrb.mxu1 %v3261_v48  ;;  %1610 = vmatpush.msrb.mxu2 %v3263_v24 }
 0x2a5   :  { %1630 = vmatpush.msra.mxu3 %v3265_v11 }
 0x2a6   :  { %1591 = vmatpush.msrb.mxu1 %v3270_v40  ;;  %1611 = vmatpush.msrb.mxu2 %v3917_v53  ;;  %v3518_v53 = vld [vmem:[#allocation9 + $0x1c0] sm:$0xff] }
 0x2a7   :  { %1631 = vmatpush.msra.mxu3 %v3918_v9  ;;  %v3521_v9 = vld [vmem:[#allocation9 + $0x1a0] sm:$0xff] }
 0x2a8   :  { %1592 = vmatpush.msrb.mxu1 %v3919_v12  ;;  %1612 = vmatpush.msrb.mxu2 %v3920_v18  ;;  %v3524_v12 = vld [vmem:[#allocation9 + $0x180] sm:$0xff] }
 0x2a9   :  { %1632 = vmatpush.msra.mxu3 %v3921_v6  ;;  %v3527_v18 = vld [vmem:[#allocation9 + $0x160] sm:$0xff] }
 0x2aa   :  { %1593 = vmatpush.msrb.mxu1 %v3288_v47  ;;  %1613 = vmatpush.msrb.mxu2 %v3290_v17  ;;  %v3530_v6 = vld [vmem:[#allocation9 + $0x140] sm:$0xff] }
 0x2ab   :  { %1633 = vmatpush.msra.mxu3 %v3292_v1 }
 0x2ac   :  { %1594 = vmatpush.msrb.mxu1 %v3297_v43  ;;  %1614 = vmatpush.msrb.mxu2 %v3299_v46  ;;  %v3925_v43 = vld [vmem:[#allocation26_spill] sm:$0xff] }
 0x2ad   :  { %1634 = vmatpush.msra.mxu3 %v3301_v35 }
 0x2ae   :  { %1595 = vmatpush.msrb.mxu1 %v3306_v50  ;;  %1615 = vmatpush.msrb.mxu2 %v3308_v55 }
 0x2af   :  { %1635 = vmatpush.msra.mxu3 %v3310_v23 }
 0x2b0   :  { %1596 = vmatpush.msrb.mxu1 %v3317_v62  ;;  %1616 = vmatpush.msrb.mxu2 %v3319_v57 }
 0x2b1   :  { %1636 = vmatpush.msra.mxu3 %v3321_v29 }
 0x2b2   :  { %1597 = vmatpush.msrb.mxu1 %v3326_v31  ;;  %1617 = vmatpush.msrb.mxu2 %v3328_v63 }
 0x2b3   :  { %1637 = vmatpush.msra.mxu3 %v3330_v8 }
 0x2b4   :  { %1598 = vmatpush.msrb.mxu1 %v3334_v44  ;;  %1618 = vmatpush.msrb.mxu2 %v3336_v59 }
 0x2b5   :  { %1638 = vmatpush.msra.mxu3 %v3338_v26 }
 0x2b6   :  { %1599 = vmatpush.msrb.mxu1 %v3341_v10  ;;  %1619 = vmatpush.msrb.mxu2 %v3343_v14 }
 0x2b7   :  { %1639 = vmatpush.msra.mxu3 %v3347_v2 }
 0x2b8   :  { %1600 = vmatpush.msrb.mxu1 %v3351_v3  ;;  %1620 = vmatpush.msrb.mxu2 %v3353_v33 }
 0x2b9   :  { %1640 = vmatpush.msra.mxu3 %v3357_v51 }
 0x2ba   :  { %1601 = vmatpush.msrb.mxu1 %v3360_v34  ;;  %1621 = vmatpush.msrb.mxu2 %v3362_v60 }
 0x2bb   :  { %1641 = vmatpush.msra.mxu3 %v3366_v27 }
 0x317   :  { %v1143_v49 = vpop.f32.mrf.mxu0  ;;  %v1163_v54 = vpop.f32.mrf.mxu1 }
 0x318   :  { %v1206_v10 = vadd.f32 %v1143_v49, %v3922_v13  ;;  %v1207_v14 = vadd.f32 %v1163_v54, %v3923_v22  ;;  %v3533_v49 = vld [vmem:[#allocation9 + $0x120] sm:$0xff] }
 0x319   :  { %v3536_v54 = vld [vmem:[#allocation9 + $0x100] sm:$0xff] }
 0x31a   :  { %v2270_v25 = vmul.f32 -1.442695, %v1206_v10  ;;  %v2271_v7 = vmul.f32 -1.442695, %v1207_v14  ;;  %v3539_v13 = vld [vmem:[#allocation9 + $0xe0] sm:$0xff] }
 0x31b   :  { %v3542_v14 = vld [vmem:[#allocation9 + $0xc0] sm:$0xff] }
 0x31c   :  { %2361 = vpow2.f32 %v2270_v25  ;;  %v3926_v25 = vld [vmem:[#allocation21_spill] sm:$0xff] }
 0x31d   :  { %2363 = vpow2.f32 %v2271_v7 }
 0x31e   :  { %v1183_v3 = vpop.f32.mrf.mxu2  ;;  %v1203_v40 = vpop.f32.mrf.mxu3 }
 0x31f   :  { %v1208_v48 = vadd.f32 %v1183_v3, %v3924_v19  ;;  %v1209_v46 = vadd.f32 %v1203_v40, %v3925_v43  ;;  %v3927_v3 = vld [vmem:[#allocation33_spill] sm:$0xff] }
 0x321   :  { %v2272_v51 = vmul.f32 -1.442695, %v1208_v48  ;;  %v3547_v48 = vld [vmem:[#allocation9 + $0xa0] sm:$0xff] }
 0x322   :  { %v2362_v24 = vpop.eup %2361 }
 0x323   :  { %v2364_v34 = vpop.eup %2363  ;;  %v1219_v11 = vadd.f32 1.0, %v2362_v24  ;;  %2365 = vpow2.f32 %v2272_v51 }
 0x324   :  { %v1220_v60 = vadd.f32 1.0, %v2364_v34  ;;  %v3550_v34 = vld [vmem:[#allocation9 + $0x80] sm:$0xff] }
 0x325   :  { %2367 = vrcp.f32 %v1219_v11  ;;  %v1233_v57 = vand.u32 2147483648, %v1219_v11  ;;  %v1231_v63 = vand.u32 2147483647, %v1219_v11  ;;  %vm1227_vm6 = vweird.f32 %v1219_v11 }
 0x326   :  { %2369 = vrcp.f32 %v1220_v60  ;;  %v1248_v29 = vand.u32 2147483648, %v1220_v60  ;;  %v1246_v44 = vand.u32 2147483647, %v1220_v60  ;;  %vm1242_vm7 = vweird.f32 %v1220_v60 }
 0x327   :  { %v1234_v33 = vor.u32 1.1754944e-38, %v1233_v57  ;;  %vm1232_vm10 = vcmp.eq.f32.partialorder %v1231_v63, 8.507059e+37  ;;  %v3929_v63 = vld [vmem:[#allocation27_spill] sm:$0xff] }
 0x328   :  { %v1249_v0 = vor.u32 1.1754944e-38, %v1248_v29  ;;  %vm1247_vm11 = vcmp.eq.f32.partialorder %v1246_v44, 8.507059e+37 }
 0x329   :  { %v2366_v47 = vpop.eup %2365 }
 0x32a   :  { %v1221_v17 = vadd.f32 1.0, %v2366_v47  ;;  %v3928_v47 = vld [vmem:[#allocation34_spill] sm:$0xff] }
 0x32b   :  { %v2368_v1 = vpop.eup %2367 }
 0x32c   :  { %v2370_v35 = vpop.eup %2369  ;;  %v1223_v50 = vmul.f32 %v2368_v1, %v1219_v11  ;;  %2371 = vrcp.f32 %v1221_v17  ;;  %vm1228_vm4 = vweird.f32 %v2368_v1  ;;  %v1263_v39 = vand.u32 2147483648, %v1221_v17  ;;  %v3552_v11 = vld [vmem:[#allocation9 + $0x60] sm:$0xff] }
 0x32d   :  { %v1238_v55 = vmul.f32 %v2370_v35, %v1220_v60  ;;  %2373 = vtanh.f32 %v1209_v46  ;;  %vm1243_vm5 = vweird.f32 %v2370_v35  ;;  %vm1229_vm8 = vmor %vm1227_vm6, %vm1228_vm4  ;;  %vm1257_vm13 = vweird.f32 %v1221_v17  ;;  %v3555_v60 = vld [vmem:[#allocation9 + $0x40] sm:$0xff] }
 0x32e   :  { %v1224_v23 = vsub.f32 1.0, %v1223_v50  ;;  %vm1244_vm9 = vmor %vm1242_vm7, %vm1243_vm5  ;;  %v1261_v32 = vand.u32 2147483647, %v1221_v17  ;;  %v1264_v58 = vor.u32 1.1754944e-38, %v1263_v39  ;;  %v3562_v46 = vld [vmem:[#allocation9] sm:$0xff] }
 0x32f   :  { %v1239_v62 = vsub.f32 1.0, %v1238_v55 }
 0x330   :  { %v1225_v31 = vmul.f32 %v2368_v1, %v1224_v23  ;;  %vm1262_vm15 = vcmp.eq.f32.partialorder %v1261_v32, 8.507059e+37 }
 0x331   :  { %v1240_v8 = vmul.f32 %v2370_v35, %v1239_v62 }
 0x332   :  { %v2372_v59 = vpop.eup %2371  ;;  %v1226_v26 = vadd.f32 %v2368_v1, %v1225_v31 }
 0x333   :  { %v1253_v2 = vmul.f32 %v2372_v59, %v1221_v17  ;;  %v1241_v27 = vadd.f32 %v2370_v35, %v1240_v8  ;;  %v2374_v30 = vpop.eup %2373  ;;  %vm1258_vm12 = vweird.f32 %v2372_v59 }
 0x334   :  { %v1230_v16 = vsel %vm1229_vm8, %v2368_v1, %v1226_v26  ;;  %vm1259_vm14 = vmor %vm1257_vm13, %vm1258_vm12  ;;  %v3559_v1 = vld [vmem:[#allocation9 + $0x20] sm:$0xff] }
 0x335   :  { %v1254_v52 = vsub.f32 1.0, %v1253_v2  ;;  %v1235_v56 = vsel %vm1232_vm10, %v1234_v33, %v1230_v16  ;;  %v1245_v37 = vsel %vm1244_vm9, %v2370_v35, %v1241_v27 }
 0x336   :  { %v1250_v4 = vsel %vm1247_vm11, %v1249_v0, %v1245_v37  ;;  %v1269_v21 = vmul.f32 %v2374_v30, %v1235_v56 }
 0x337   :  { %v1255_v61 = vmul.f32 %v2372_v59, %v1254_v52  ;;  %v1268_v38 = vmul.f32 %v1250_v4, %v3423_v5  ;;  %v3515_v5 = vld [vmem:[#allocation9 + $0x1e0] sm:$0xff] }
 0x338   :  { %1566 = vmatpush.msrb.mxu0 %v3515_v5 }
 0x339   :  { %v3506_v45 = vadd.f32 %v1269_v21, %v1268_v38  ;;  %v1256_v15 = vadd.f32 %v2372_v59, %v1255_v61 }
 0x33a   :  { %1567 = vmatpush.msrb.mxu0 %v3518_v53 }
 0x33b   :  { %2375 = vtanh.f32 %v3506_v45  ;;  %v1260_v28 = vsel %vm1259_vm14, %v2372_v59, %v1256_v15 }
 0x33c   :  { %v1265_v36 = vsel %vm1262_vm15, %v1264_v58, %v1260_v28  ;;  %1568 = vmatpush.msrb.mxu0 %v3521_v9 }
 0x33e   :  { %1569 = vmatpush.msrb.mxu0 %v3524_v12 }
 0x340   :  { %1570 = vmatpush.msrb.mxu0 %v3527_v18 }
 0x341   :  { %v2376_v20 = vpop.eup %2375 }
 0x342   :  { %v3509_v42 = vmul.f32 %v2376_v20, %v1265_v36  ;;  %1571 = vmatpush.msrb.mxu0 %v3530_v6 }
 0x344   :  { %1362 = vmatmul.f32.vlgmr.msra.gmra.mxu0 %v3509_v42  ;;  %1382 = vmatmul.f32.vlgmr.msra.gmra.mxu1 %v3509_v42 }
 0x345   :  { %1402 = vmatmul.f32.vlgmr.msra.gmra.mxu2 %v3509_v42  ;;  %1422 = vmatmul.f32.vlgmr.msrb.gmra.mxu3 %v3509_v42 }
 0x346   :  { %1572 = vmatpush.msrb.mxu0 %v3533_v49 }
 0x348   :  { %1573 = vmatpush.msrb.mxu0 %v3536_v54 }
 0x34a   :  { %1574 = vmatpush.msrb.mxu0 %v3539_v13 }
 0x34c   :  { %1575 = vmatpush.msrb.mxu0 %v3542_v14 }
 0x34e   :  { %1576 = vmatpush.msrb.mxu0 %v3547_v48 }
 0x350   :  { %1577 = vmatpush.msrb.mxu0 %v3550_v34 }
 0x352   :  { %1578 = vmatpush.msrb.mxu0 %v3552_v11 }
 0x354   :  { %1579 = vmatpush.msrb.mxu0 %v3555_v60 }
 0x356   :  { %1580 = vmatpush.msrb.mxu0 %v3559_v1 }
 0x358   :  { %1581 = vmatpush.msrb.mxu0 %v3562_v46 }
 0x35a   :  { %1786 = vmatpush.msra.mxu0 %v3515_v5 }
 0x35c   :  { %1787 = vmatpush.msra.mxu0 %v3518_v53 }
 0x35e   :  { %1788 = vmatpush.msra.mxu0 %v3521_v9 }
 0x360   :  { %1789 = vmatpush.msra.mxu0 %v3524_v12 }
 0x362   :  { %1790 = vmatpush.msra.mxu0 %v3527_v18 }
 0x364   :  { %1791 = vmatpush.msra.mxu0 %v3530_v6 }
 0x366   :  { %1792 = vmatpush.msra.mxu0 %v3533_v49 }
 0x368   :  { %1793 = vmatpush.msra.mxu0 %v3536_v54 }
 0x36a   :  { %1794 = vmatpush.msra.mxu0 %v3539_v13 }
 0x36c   :  { %1795 = vmatpush.msra.mxu0 %v3542_v14 }
 0x36e   :  { %1796 = vmatpush.msra.mxu0 %v3547_v48 }
 0x370   :  { %1797 = vmatpush.msra.mxu0 %v3550_v34 }
 0x372   :  { %1798 = vmatpush.msra.mxu0 %v3552_v11 }
 0x374   :  { %1799 = vmatpush.msra.mxu0 %v3555_v60 }
 0x376   :  { %1800 = vmatpush.msra.mxu0 %v3559_v1 }
 0x378   :  { %1801 = vmatpush.msra.mxu0 %v3562_v46 }
 0x3c1   :  { %v1363_v10 = vpop.f32.mrf.mxu0  ;;  %v1383_v22 = vpop.f32.mrf.mxu1 }
 0x3c2   :  { %v1426_v7 = vadd.f32 %v1363_v10, %v3926_v25  ;;  %v1427_v19 = vadd.f32 %v1383_v22, %v3927_v3 }
 0x3c4   :  { %v2273_v51 = vmul.f32 -1.442695, %v1426_v7  ;;  %v2274_v24 = vmul.f32 -1.442695, %v1427_v19 }
 0x3c6   :  { %2377 = vpow2.f32 %v2273_v51 }
 0x3c7   :  { %2379 = vpow2.f32 %v2274_v24 }
 0x3c8   :  { %v1403_v40 = vpop.f32.mrf.mxu2  ;;  %v1423_v62 = vpop.f32.mrf.mxu3 }
 0x3c9   :  { %v1428_v17 = vadd.f32 %v1403_v40, %v3928_v47  ;;  %v1429_v8 = vadd.f32 %v1423_v62, %v3929_v63  ;;  %v3672_v62 = vld [vmem:[#allocation9 + $0x108] sm:$0xff]  ;;  %v3683_v63 = vld [vmem:[#allocation9 + $0xf0] sm:$0xff] }
 0x3cb   :  { %v2275_v43 = vmul.f32 -1.442695, %v1428_v17 }
 0x3cc   :  { %v2378_v35 = vpop.eup %2377 }
 0x3cd   :  { %v2380_v50 = vpop.eup %2379  ;;  %v1439_v55 = vadd.f32 1.0, %v2378_v35  ;;  %2381 = vpow2.f32 %v2275_v43  ;;  %v3654_v43 = vld [vmem:[#allocation9 + $0x148] sm:$0xff]  ;;  %v3658_v35 = vld [vmem:[#allocation9 + $0x158] sm:$0xff] }
 0x3ce   :  { %v1440_v23 = vadd.f32 1.0, %v2380_v50  ;;  %v3663_v50 = vld [vmem:[#allocation9 + $0x128] sm:$0xff] }
 0x3cf   :  { %2383 = vrcp.f32 %v1439_v55  ;;  %v1453_v27 = vand.u32 2147483648, %v1439_v55  ;;  %v1451_v30 = vand.u32 2147483647, %v1439_v55  ;;  %vm1447_vm2 = vweird.f32 %v1439_v55 }
 0x3d0   :  { %2385 = vrcp.f32 %v1440_v23  ;;  %v1468_v0 = vand.u32 2147483648, %v1440_v23  ;;  %v1466_v56 = vand.u32 2147483647, %v1440_v23  ;;  %vm1462_vm3 = vweird.f32 %v1440_v23 }
 0x3d1   :  { %v1454_v61 = vor.u32 1.1754944e-38, %v1453_v27  ;;  %vm1452_vm6 = vcmp.eq.f32.partialorder %v1451_v30, 8.507059e+37  ;;  %v3930_v27 = vld [vmem:[#allocation22_spill] sm:$0xff] }
 0x3d2   :  { %v1469_v15 = vor.u32 1.1754944e-38, %v1468_v0  ;;  %vm1467_vm7 = vcmp.eq.f32.partialorder %v1466_v56, 8.507059e+37  ;;  %v3703_v56 = vld [vmem:[#allocation9 + $0xb0] sm:$0xff] }
 0x3d3   :  { %v2382_v57 = vpop.eup %2381 }
 0x3d4   :  { %v1441_v29 = vadd.f32 1.0, %v2382_v57  ;;  %v3674_v57 = vld [vmem:[#allocation9 + $0x110] sm:$0xff] }
 0x3d5   :  { %v2384_v31 = vpop.eup %2383 }
 0x3d6   :  { %v2386_v44 = vpop.eup %2385  ;;  %v1443_v59 = vmul.f32 %v2384_v31, %v1439_v55  ;;  %2387 = vrcp.f32 %v1441_v29  ;;  %vm1448_vm0 = vweird.f32 %v2384_v31  ;;  %v1483_v19 = vand.u32 2147483648, %v1441_v29  ;;  %v3665_v55 = vld [vmem:[#allocation9 + $0x130] sm:$0xff] }
 0x3d7   :  { %v1458_v26 = vmul.f32 %v2386_v44, %v1440_v23  ;;  %2389 = vtanh.f32 %v1429_v8  ;;  %vm1463_vm1 = vweird.f32 %v2386_v44  ;;  %vm1449_vm4 = vmor %vm1447_vm2, %vm1448_vm0  ;;  %vm1477_vm9 = vweird.f32 %v1441_v29  ;;  %v3667_v23 = vld [vmem:[#allocation9 + $0x138] sm:$0xff] }
 0x3d8   :  { %v1444_v2 = vsub.f32 1.0, %v1443_v59  ;;  %vm1464_vm5 = vmor %vm1462_vm3, %vm1463_vm1  ;;  %v1481_v51 = vand.u32 2147483647, %v1441_v29  ;;  %v3685_v8 = vld [vmem:[#allocation9 + $0xf8] sm:$0xff] }
 0x3d9   :  { %v1459_v33 = vsub.f32 1.0, %v1458_v26  ;;  %v3690_v26 = vld [vmem:[#allocation9 + $0xc8] sm:$0xff] }
 0x3da   :  { %v1445_v16 = vmul.f32 %v2384_v31, %v1444_v2  ;;  %vm1482_vm11 = vcmp.eq.f32.partialorder %v1481_v51, 8.507059e+37  ;;  %v3692_v2 = vld [vmem:[#allocation9 + $0xd0] sm:$0xff]  ;;  %v3741_v51 = vld [vmem:[#allocation9 + $0x38] sm:$0xff] }
 0x3db   :  { %v1460_v52 = vmul.f32 %v2386_v44, %v1459_v33  ;;  %v3694_v33 = vld [vmem:[#allocation9 + $0xd8] sm:$0xff] }
 0x3dc   :  { %v2388_v37 = vpop.eup %2387  ;;  %v1446_v4 = vadd.f32 %v2384_v31, %v1445_v16  ;;  %v3931_v16 = vld [vmem:[#allocation35_spill] sm:$0xff] }
 0x3dd   :  { %v1473_v21 = vmul.f32 %v2388_v37, %v1441_v29  ;;  %v1461_v38 = vadd.f32 %v2386_v44, %v1460_v52  ;;  %v2390_v32 = vpop.eup %2389  ;;  %vm1478_vm8 = vweird.f32 %v2388_v37  ;;  %v3676_v29 = vld [vmem:[#allocation9 + $0x118] sm:$0xff]  ;;  %v3701_v52 = vld [vmem:[#allocation9 + $0xa8] sm:$0xff] }
 0x3de   :  { %v1450_v39 = vsel %vm1449_vm4, %v2384_v31, %v1446_v4  ;;  %vm1479_vm10 = vmor %vm1477_vm9, %vm1478_vm8  ;;  %v3681_v31 = vld [vmem:[#allocation9 + $0xe8] sm:$0xff] }
 0x3df   :  { %v1474_v28 = vsub.f32 1.0, %v1473_v21  ;;  %v1455_v58 = vsel %vm1452_vm6, %v1454_v61, %v1450_v39  ;;  %v1465_v20 = vsel %vm1464_vm5, %v2386_v44, %v1461_v38  ;;  %v3710_v61 = vld [vmem:[#allocation9 + $0x88] sm:$0xff]  ;;  %v3712_v38 = vld [vmem:[#allocation9 + $0x90] sm:$0xff] }
 0x3e0   :  { %v1470_v36 = vsel %vm1467_vm7, %v1469_v15, %v1465_v20  ;;  %v1489_v10 = vmul.f32 %v2390_v32, %v1455_v58  ;;  %v3714_v15 = vld [vmem:[#allocation9 + $0x98] sm:$0xff]  ;;  %v3718_v39 = vld [vmem:[#allocation9 + $0x68] sm:$0xff]  ;;  %v3720_v32 = vld [vmem:[#allocation9 + $0x70] sm:$0xff] }
 0x3e1   :  { %v1475_v22 = vmul.f32 %v2388_v37, %v1474_v28  ;;  %v1488_v25 = vmul.f32 %v1470_v36, %v3506_v45  ;;  %v1484_v45 = vor.u32 1.1754944e-38, %v1483_v19  ;;  %v3722_v28 = vld [vmem:[#allocation9 + $0x78] sm:$0xff]  ;;  %v3725_v58 = vld [vmem:[#allocation9 + $0x48] sm:$0xff]  ;;  %v3727_v20 = vld [vmem:[#allocation9 + $0x50] sm:$0xff] }
 0x3e2   :  { %v3737_v19 = vld [vmem:[#allocation9 + $0x30] sm:$0xff] }
 0x3e3   :  { %v3578_v7 = vadd.f32 %v1489_v10, %v1488_v25  ;;  %v1476_v3 = vadd.f32 %v2388_v37, %v1475_v22  ;;  %v3731_v10 = vld [vmem:[#allocation9 + $0x58] sm:$0xff]  ;;  %v3932_v22 = vld [vmem:[#allocation36_spill] sm:$0xff] }
 0x3e5   :  { %2391 = vtanh.f32 %v3578_v7  ;;  %v1480_v24 = vsel %vm1479_vm10, %v2388_v37, %v1476_v3  ;;  %v3705_v37 = vld [vmem:[#allocation9 + $0xb8] sm:$0xff]  ;;  %v3735_v3 = vld [vmem:[#allocation9 + $0x28] sm:$0xff] }
 0x3e6   :  { %v1485_v47 = vsel %vm1482_vm11, %v1484_v45, %v1480_v24  ;;  %v3744_v45 = vld [vmem:[#allocation9 + $0x8] sm:$0xff] }
 0x3eb   :  { %v2392_v40 = vpop.eup %2391 }
 0x3ec   :  { %v3586_v17 = vmul.f32 %v2392_v40, %v1485_v47  ;;  %v3746_v40 = vld [vmem:[#allocation9 + $0x10] sm:$0xff] }
 0x3ee   :  { %1582 = vmatmul.f32.vlgmr.msrb.gmra.mxu0 %v3586_v17  ;;  %1602 = vmatmul.f32.vlgmr.msrb.gmra.mxu1 %v3586_v17 }
 0x3ef   :  { %1622 = vmatmul.f32.vlgmr.msrb.gmra.mxu2 %v3586_v17  ;;  %1642 = vmatmul.f32.vlgmr.msra.gmra.mxu3 %v3586_v17 }
 0x3f0   :  { %2006 = vmatpush.msrb.mxu0 %v3515_v5  ;;  %v3609_v5 = vld [vmem:[#allocation9 + $0x1e8] sm:$0xff] }
 0x3f1   :  { %1806 = vmatpush.msra.mxu1 %v3609_v5 }
 0x3f2   :  { %2007 = vmatpush.msrb.mxu0 %v3518_v53  ;;  %v3611_v53 = vld [vmem:[#allocation9 + $0x1f0] sm:$0xff] }
 0x3f3   :  { %1826 = vmatpush.msra.mxu2 %v3611_v53 }
 0x3f4   :  { %2008 = vmatpush.msrb.mxu0 %v3521_v9  ;;  %v3613_v9 = vld [vmem:[#allocation9 + $0x1f8] sm:$0xff] }
 0x3f5   :  { %1846 = vmatpush.msrb.mxu3 %v3613_v9 }
 0x3f6   :  { %2009 = vmatpush.msrb.mxu0 %v3524_v12  ;;  %v3618_v12 = vld [vmem:[#allocation9 + $0x1c8] sm:$0xff] }
 0x3f7   :  { %1807 = vmatpush.msra.mxu1 %v3618_v12 }
 0x3f8   :  { %2010 = vmatpush.msrb.mxu0 %v3527_v18  ;;  %v3620_v18 = vld [vmem:[#allocation9 + $0x1d0] sm:$0xff] }
 0x3f9   :  { %1827 = vmatpush.msra.mxu2 %v3620_v18 }
 0x3fa   :  { %2011 = vmatpush.msrb.mxu0 %v3530_v6  ;;  %v3622_v6 = vld [vmem:[#allocation9 + $0x1d8] sm:$0xff] }
 0x3fb   :  { %1847 = vmatpush.msrb.mxu3 %v3622_v6 }
 0x3fc   :  { %2012 = vmatpush.msrb.mxu0 %v3533_v49  ;;  %v3627_v49 = vld [vmem:[#allocation9 + $0x1a8] sm:$0xff] }
 0x3fd   :  { %1808 = vmatpush.msra.mxu1 %v3627_v49 }
 0x3fe   :  { %2013 = vmatpush.msrb.mxu0 %v3536_v54  ;;  %v3629_v54 = vld [vmem:[#allocation9 + $0x1b0] sm:$0xff] }
 0x3ff   :  { %1828 = vmatpush.msra.mxu2 %v3629_v54 }
 0x400   :  { %2014 = vmatpush.msrb.mxu0 %v3539_v13  ;;  %v3631_v13 = vld [vmem:[#allocation9 + $0x1b8] sm:$0xff] }
 0x401   :  { %1848 = vmatpush.msrb.mxu3 %v3631_v13 }
 0x402   :  { %2015 = vmatpush.msrb.mxu0 %v3542_v14  ;;  %v3636_v14 = vld [vmem:[#allocation9 + $0x188] sm:$0xff] }
 0x403   :  { %1809 = vmatpush.msra.mxu1 %v3636_v14 }
 0x404   :  { %2016 = vmatpush.msrb.mxu0 %v3547_v48  ;;  %v3638_v48 = vld [vmem:[#allocation9 + $0x190] sm:$0xff] }
 0x405   :  { %1829 = vmatpush.msra.mxu2 %v3638_v48 }
 0x406   :  { %2017 = vmatpush.msrb.mxu0 %v3550_v34  ;;  %v3640_v34 = vld [vmem:[#allocation9 + $0x198] sm:$0xff] }
 0x407   :  { %1849 = vmatpush.msrb.mxu3 %v3640_v34 }
 0x408   :  { %2018 = vmatpush.msrb.mxu0 %v3552_v11  ;;  %v3645_v11 = vld [vmem:[#allocation9 + $0x168] sm:$0xff] }
 0x409   :  { %1810 = vmatpush.msra.mxu1 %v3645_v11 }
 0x40a   :  { %2019 = vmatpush.msrb.mxu0 %v3555_v60  ;;  %v3647_v60 = vld [vmem:[#allocation9 + $0x170] sm:$0xff] }
 0x40b   :  { %1830 = vmatpush.msra.mxu2 %v3647_v60  ;;  %1811 = vmatpush.msra.mxu1 %v3654_v43 }
 0x40c   :  { %2020 = vmatpush.msrb.mxu0 %v3559_v1  ;;  %v3649_v1 = vld [vmem:[#allocation9 + $0x178] sm:$0xff] }
 0x40d   :  { %1850 = vmatpush.msrb.mxu3 %v3649_v1  ;;  %1812 = vmatpush.msra.mxu1 %v3663_v50 }
 0x40e   :  { %2021 = vmatpush.msrb.mxu0 %v3562_v46  ;;  %v3656_v46 = vld [vmem:[#allocation9 + $0x150] sm:$0xff] }
 0x40f   :  { %1831 = vmatpush.msra.mxu2 %v3656_v46  ;;  %1851 = vmatpush.msrb.mxu3 %v3658_v35 }
 0x410   :  { %1813 = vmatpush.msra.mxu1 %v3672_v62 }
 0x411   :  { %1832 = vmatpush.msra.mxu2 %v3665_v55  ;;  %1852 = vmatpush.msrb.mxu3 %v3667_v23 }
 0x412   :  { %1814 = vmatpush.msra.mxu1 %v3681_v31 }
 0x413   :  { %1833 = vmatpush.msra.mxu2 %v3674_v57  ;;  %1853 = vmatpush.msrb.mxu3 %v3676_v29 }
 0x414   :  { %1815 = vmatpush.msra.mxu1 %v3690_v26 }
 0x415   :  { %1834 = vmatpush.msra.mxu2 %v3683_v63  ;;  %1854 = vmatpush.msrb.mxu3 %v3685_v8 }
 0x416   :  { %1816 = vmatpush.msra.mxu1 %v3701_v52 }
 0x417   :  { %1835 = vmatpush.msra.mxu2 %v3692_v2  ;;  %1855 = vmatpush.msrb.mxu3 %v3694_v33 }
 0x418   :  { %1817 = vmatpush.msra.mxu1 %v3710_v61 }
 0x419   :  { %1836 = vmatpush.msra.mxu2 %v3703_v56  ;;  %1856 = vmatpush.msrb.mxu3 %v3705_v37 }
 0x41a   :  { %1818 = vmatpush.msra.mxu1 %v3718_v39 }
 0x41b   :  { %1837 = vmatpush.msra.mxu2 %v3712_v38  ;;  %1857 = vmatpush.msrb.mxu3 %v3714_v15 }
 0x41c   :  { %1819 = vmatpush.msra.mxu1 %v3725_v58 }
 0x41d   :  { %1838 = vmatpush.msra.mxu2 %v3720_v32  ;;  %1858 = vmatpush.msrb.mxu3 %v3722_v28 }
 0x41e   :  { %1820 = vmatpush.msra.mxu1 %v3735_v3 }
 0x41f   :  { %1839 = vmatpush.msra.mxu2 %v3727_v20  ;;  %1859 = vmatpush.msrb.mxu3 %v3731_v10 }
 0x420   :  { %1821 = vmatpush.msra.mxu1 %v3744_v45 }
 0x421   :  { %1840 = vmatpush.msra.mxu2 %v3737_v19  ;;  %1860 = vmatpush.msrb.mxu3 %v3741_v51 }
 0x422   :  { %2026 = vmatpush.msrb.mxu1 %v3609_v5 }
 0x423   :  { %1841 = vmatpush.msra.mxu2 %v3746_v40 }
 0x424   :  { %2027 = vmatpush.msrb.mxu1 %v3618_v12 }
 0x425   :  { %2046 = vmatpush.msrb.mxu2 %v3611_v53  ;;  %v3933_v53 = vld [vmem:[#allocation28_spill] sm:$0xff] }
 0x426   :  { %2028 = vmatpush.msrb.mxu1 %v3627_v49 }
 0x427   :  { %2047 = vmatpush.msrb.mxu2 %v3620_v18 }
 0x428   :  { %2029 = vmatpush.msrb.mxu1 %v3636_v14 }
 0x429   :  { %2048 = vmatpush.msrb.mxu2 %v3629_v54 }
 0x42a   :  { %2030 = vmatpush.msrb.mxu1 %v3645_v11 }
 0x42b   :  { %2049 = vmatpush.msrb.mxu2 %v3638_v48 }
 0x42c   :  { %2031 = vmatpush.msrb.mxu1 %v3654_v43 }
 0x42d   :  { %2050 = vmatpush.msrb.mxu2 %v3647_v60 }
 0x42e   :  { %2032 = vmatpush.msrb.mxu1 %v3663_v50 }
 0x42f   :  { %2051 = vmatpush.msrb.mxu2 %v3656_v46 }
 0x430   :  { %2033 = vmatpush.msrb.mxu1 %v3672_v62 }
 0x431   :  { %2052 = vmatpush.msrb.mxu2 %v3665_v55 }
 0x432   :  { %2034 = vmatpush.msrb.mxu1 %v3681_v31 }
 0x433   :  { %2053 = vmatpush.msrb.mxu2 %v3674_v57 }
 0x434   :  { %2035 = vmatpush.msrb.mxu1 %v3690_v26 }
 0x435   :  { %2054 = vmatpush.msrb.mxu2 %v3683_v63 }
 0x436   :  { %2036 = vmatpush.msrb.mxu1 %v3701_v52  ;;  %v2178_v52 = vld [vmem:[#allocation13 + $0x78] sm:$0xff] }
 0x437   :  { %2055 = vmatpush.msrb.mxu2 %v3692_v2 }
 0x438   :  { %2037 = vmatpush.msrb.mxu1 %v3710_v61  ;;  %v2175_v61 = vld [vmem:[#allocation13 + $0x60] sm:$0xff] }
 0x439   :  { %2056 = vmatpush.msrb.mxu2 %v3703_v56  ;;  %v2177_v56 = vld [vmem:[#allocation13 + $0x70] sm:$0xff] }
 0x43a   :  { %2038 = vmatpush.msrb.mxu1 %v3718_v39 }
 0x43b   :  { %2057 = vmatpush.msrb.mxu2 %v3712_v38  ;;  %v2174_v38 = vld [vmem:[#allocation13 + $0x58] sm:$0xff] }
 0x43c   :  { %2039 = vmatpush.msrb.mxu1 %v3725_v58 }
 0x43d   :  { %2058 = vmatpush.msrb.mxu2 %v3720_v32  ;;  %v2173_v32 = vld [vmem:[#allocation13 + $0x50] sm:$0xff] }
 0x43e   :  { %2040 = vmatpush.msrb.mxu1 %v3735_v3  ;;  %v2172_v3 = vld [vmem:[#allocation13 + $0x48] sm:$0xff] }
 0x43f   :  { %2059 = vmatpush.msrb.mxu2 %v3727_v20  ;;  %v3935_v20 = vld [vmem:[#allocation37_spill] sm:$0xff] }
 0x440   :  { %2041 = vmatpush.msrb.mxu1 %v3744_v45  ;;  %v2171_v45 = vld [vmem:[#allocation13 + $0x40] sm:$0xff] }
 0x441   :  { %2060 = vmatpush.msrb.mxu2 %v3737_v19 }
 0x443   :  { %2061 = vmatpush.msrb.mxu2 %v3746_v40  ;;  %v2170_v40 = vld [vmem:[#allocation13 + $0x38] sm:$0xff] }
 0x46b   :  { %v1583_v44 = vpop.f32.mrf.mxu0  ;;  %v1603_v59 = vpop.f32.mrf.mxu1 }
 0x46c   :  { %v1646_v0 = vadd.f32 %v1583_v44, %v3930_v27  ;;  %v1647_v30 = vadd.f32 %v1603_v59, %v3931_v16  ;;  %v3750_v44 = vld [vmem:[#allocation9 + $0x18] sm:$0xff] }
 0x46d   :  { %1861 = vmatpush.msrb.mxu3 %v3750_v44 }
 0x46e   :  { %v2276_v4 = vmul.f32 -1.442695, %v1646_v0  ;;  %v2277_v21 = vmul.f32 -1.442695, %v1647_v30 }
 0x46f   :  { %2066 = vmatpush.msra.mxu3 %v3613_v9 }
 0x470   :  { %2393 = vpow2.f32 %v2276_v4 }
 0x471   :  { %2395 = vpow2.f32 %v2277_v21  ;;  %2067 = vmatpush.msra.mxu3 %v3622_v6 }
 0x472   :  { %v1623_v36 = vpop.f32.mrf.mxu2  ;;  %v1643_v16 = vpop.f32.mrf.mxu3 }
 0x473   :  { %v1648_v25 = vadd.f32 %v1623_v36, %v3932_v22  ;;  %2068 = vmatpush.msra.mxu3 %v3631_v13  ;;  %v1649_v21 = vadd.f32 %v1643_v16, %v3933_v53 }
 0x475   :  { %v2278_v24 = vmul.f32 -1.442695, %v1648_v25  ;;  %2069 = vmatpush.msra.mxu3 %v3640_v34 }
 0x476   :  { %v2394_v47 = vpop.eup %2393 }
 0x477   :  { %v2396_v59 = vpop.eup %2395  ;;  %v3752_v27 = vadd.f32 1.0, %v2394_v47  ;;  %2397 = vpow2.f32 %v2278_v24  ;;  %2070 = vmatpush.msra.mxu3 %v3649_v1 }
 0x478   :  { %v3755_v0 = vadd.f32 1.0, %v2396_v59 }
 0x479   :  { %2399 = vrcp.f32 %v3752_v27  ;;  %v1673_v54 = vand.u32 2147483648, %v3752_v27  ;;  %v1671_v48 = vand.u32 2147483647, %v3752_v27  ;;  %2071 = vmatpush.msra.mxu3 %v3658_v35  ;;  %vm1667_vm14 = vweird.f32 %v3752_v27 }
 0x47a   :  { %2401 = vrcp.f32 %v3755_v0  ;;  %v1688_v13 = vand.u32 2147483648, %v3755_v0  ;;  %v1686_v11 = vand.u32 2147483647, %v3755_v0  ;;  %vm1682_vm15 = vweird.f32 %v3755_v0 }
 0x47b   :  { %2072 = vmatpush.msra.mxu3 %v3667_v23  ;;  %v1674_v46 = vor.u32 1.1754944e-38, %v1673_v54  ;;  %vm1672_vm2 = vcmp.eq.f32.partialorder %v1671_v48, 8.507059e+37 }
 0x47c   :  { %v1689_v50 = vor.u32 1.1754944e-38, %v1688_v13  ;;  %vm1687_vm3 = vcmp.eq.f32.partialorder %v1686_v11, 8.507059e+37  ;;  %v3937_v11 = vld [vmem:[#allocation29_spill] sm:$0xff] }
 0x47d   :  { %v2398_v30 = vpop.eup %2397  ;;  %2073 = vmatpush.msra.mxu3 %v3676_v29 }
 0x47e   :  { %v3769_v4 = vadd.f32 1.0, %v2398_v30  ;;  %v2168_v30 = vld [vmem:[#allocation13 + $0x28] sm:$0xff] }
 0x47f   :  { %v2400_v5 = vpop.eup %2399  ;;  %2074 = vmatpush.msra.mxu3 %v3685_v8 }
 0x480   :  { %v2402_v9 = vpop.eup %2401  ;;  %v1663_v12 = vmul.f32 %v2400_v5, %v3752_v27  ;;  %2403 = vrcp.f32 %v3769_v4  ;;  %vm1668_vm12 = vweird.f32 %v2400_v5  ;;  %v1703_v31 = vand.u32 2147483648, %v3769_v4 }
 0x481   :  { %v1678_v18 = vmul.f32 %v2402_v9, %v3755_v0  ;;  %2405 = vtanh.f32 %v1649_v21  ;;  %vm1683_vm13 = vweird.f32 %v2402_v9  ;;  %vm1669_vm0 = vmor %vm1667_vm14, %vm1668_vm12  ;;  %2075 = vmatpush.msra.mxu3 %v3694_v33  ;;  %vm1697_vm5 = vweird.f32 %v3769_v4  ;;  %v3936_v0 = vld [vmem:[#allocation38_spill] sm:$0xff] }
 0x482   :  { %v1664_v6 = vsub.f32 1.0, %v1663_v12  ;;  %vm1684_vm1 = vmor %vm1682_vm15, %vm1683_vm13  ;;  %v1704_v8 = vor.u32 1.1754944e-38, %v1703_v31 }
 0x483   :  { %v1679_v49 = vsub.f32 1.0, %v1678_v18  ;;  %2076 = vmatpush.msra.mxu3 %v3705_v37  ;;  %v2176_v37 = vld [vmem:[#allocation13 + $0x68] sm:$0xff]  ;;  %v2166_v18 = vld [vmem:[#allocation13 + $0x18] sm:$0xff] }
 0x484   :  { %v1665_v14 = vmul.f32 %v2400_v5, %v1664_v6  ;;  %v2165_v6 = vld [vmem:[#allocation13 + $0x10] sm:$0xff] }
 0x485   :  { %v1680_v34 = vmul.f32 %v2402_v9, %v1679_v49  ;;  %2077 = vmatpush.msra.mxu3 %v3714_v15  ;;  %v2164_v49 = vld [vmem:[#allocation13 + $0x8] sm:$0xff] }
 0x486   :  { %v2404_v60 = vpop.eup %2403  ;;  %v1666_v1 = vadd.f32 %v2400_v5, %v1665_v14  ;;  %v2163_v14 = vld [vmem:[#allocation13] sm:$0xff] }
 0x487   :  { %v1693_v43 = vmul.f32 %v2404_v60, %v3769_v4  ;;  %v1681_v35 = vadd.f32 %v2402_v9, %v1680_v34  ;;  %v2406_v55 = vpop.eup %2405  ;;  %vm1698_vm4 = vweird.f32 %v2404_v60  ;;  %2078 = vmatpush.msra.mxu3 %v3722_v28  ;;  %v3934_v28 = vld [vmem:[#allocation23_spill] sm:$0xff] }
 0x488   :  { %v1670_v36 = vsel %vm1669_vm0, %v2400_v5, %v1666_v1  ;;  %vm1699_vm6 = vmor %vm1697_vm5, %vm1698_vm4  ;;  %v2167_v5 = vld [vmem:[#allocation13 + $0x20] sm:$0xff] }
 0x489   :  { %v1694_v23 = vsub.f32 1.0, %v1693_v43  ;;  %v1675_v22 = vsel %vm1672_vm2, %v1674_v46, %v1670_v36  ;;  %v1685_v25 = vsel %vm1684_vm1, %v2402_v9, %v1681_v35  ;;  %2079 = vmatpush.msra.mxu3 %v3731_v10 }
 0x48a   :  { %v1690_v24 = vsel %vm1687_vm3, %v1689_v50, %v1685_v25  ;;  %v1709_v47 = vmul.f32 %v2406_v55, %v1675_v22 }
 0x48b   :  { %v1695_v62 = vmul.f32 %v2404_v60, %v1694_v23  ;;  %v1708_v59 = vmul.f32 %v1690_v24, %v3578_v7  ;;  %v1701_v7 = vand.u32 2147483647, %v3769_v4  ;;  %2080 = vmatpush.msra.mxu3 %v3741_v51 }
 0x48d   :  { %v3807_v57 = vadd.f32 %v1709_v47, %v1708_v59  ;;  %v1696_v29 = vadd.f32 %v2404_v60, %v1695_v62  ;;  %vm1702_vm7 = vcmp.eq.f32.partialorder %v1701_v7, 8.507059e+37  ;;  %2081 = vmatpush.msra.mxu3 %v3750_v44  ;;  %v2169_v44 = vld [vmem:[#allocation13 + $0x30] sm:$0xff] }
 0x48f   :  { %2407 = vtanh.f32 %v3807_v57  ;;  %v1700_v63 = vsel %vm1699_vm6, %v2404_v60, %v1696_v29 }
 0x490   :  { %v1705_v2 = vsel %vm1702_vm7, %v1704_v8, %v1700_v63 }
 0x495   :  { %v2408_v26 = vpop.eup %2407 }
 0x496   :  { %v3826_v33 = vmul.f32 %v2408_v26, %v1705_v2 }
 0x498   :  { %1802 = vmatmul.f32.vlgmr.msra.gmra.mxu0 %v3826_v33  ;;  %1822 = vmatmul.f32.vlgmr.msra.gmra.mxu1 %v3826_v33 }
 0x499   :  { %1842 = vmatmul.f32.vlgmr.msra.gmra.mxu2 %v3826_v33  ;;  %1862 = vmatmul.f32.vlgmr.msrb.gmra.mxu3 %v3826_v33 }
 0x49a   :  { %2183 = vmatpush.msra.mxu0 %v2178_v52 }
 0x49c   :  { %2184 = vmatpush.msra.mxu0 %v2177_v56 }
 0x49e   :  { %2185 = vmatpush.msra.mxu0 %v2176_v37 }
 0x4a0   :  { %2186 = vmatpush.msra.mxu0 %v2175_v61 }
 0x4a2   :  { %2187 = vmatpush.msra.mxu0 %v2174_v38 }
 0x4a4   :  { %2188 = vmatpush.msra.mxu0 %v2173_v32 }
 0x4a6   :  { %2189 = vmatpush.msra.mxu0 %v2172_v3 }
 0x4a8   :  { %2190 = vmatpush.msra.mxu0 %v2171_v45 }
 0x4aa   :  { %2191 = vmatpush.msra.mxu0 %v2170_v40 }
 0x4ac   :  { %2192 = vmatpush.msra.mxu0 %v2169_v44  ;;  %v3940_v44 = vld [vmem:[#allocation25_spill] sm:$0xff] }
 0x4ae   :  { %2193 = vmatpush.msra.mxu0 %v2168_v30 }
 0x4b0   :  { %2194 = vmatpush.msra.mxu0 %v2167_v5 }
 0x4b2   :  { %2195 = vmatpush.msra.mxu0 %v2166_v18 }
 0x4b4   :  { %2196 = vmatpush.msra.mxu0 %v2165_v6 }
 0x4b6   :  { %2197 = vmatpush.msra.mxu0 %v2164_v49 }
 0x4b8   :  { %2198 = vmatpush.msra.mxu0 %v2163_v14 }
 0x515   :  { %v1803_v15 = vpop.f32.mrf.mxu0  ;;  %v1823_v39 = vpop.f32.mrf.mxu1 }
 0x516   :  { %v1866_v58 = vadd.f32 %v1803_v15, %v3934_v28  ;;  %v1867_v10 = vadd.f32 %v1823_v39, %v3935_v20 }
 0x518   :  { %v2279_v19 = vmul.f32 -1.442695, %v1866_v58  ;;  %v2280_v51 = vmul.f32 -1.442695, %v1867_v10 }
 0x51a   :  { %2409 = vpow2.f32 %v2279_v19 }
 0x51b   :  { %2411 = vpow2.f32 %v2280_v51  ;;  %v3939_v51 = vld [vmem:[#allocation42_spill] sm:$0xff] }
 0x51c   :  { %v1843_v27 = vpop.f32.mrf.mxu2  ;;  %v1863_v54 = vpop.f32.mrf.mxu3 }
 0x51d   :  { %v1868_v16 = vadd.f32 %v1843_v27, %v3936_v0  ;;  %v1869_v60 = vadd.f32 %v1863_v54, %v3937_v11  ;;  %v3941_v0 = vld [vmem:[#allocation39_spill] sm:$0xff]  ;;  %v3943_v11 = vld [vmem:[#allocation32_spill] sm:$0xff] }
 0x51f   :  { %v2281_v4 = vmul.f32 -1.442695, %v1868_v16 }
 0x520   :  { %v2410_v53 = vpop.eup %2409 }
 0x521   :  { %v2412_v21 = vpop.eup %2411  ;;  %v1879_v9 = vadd.f32 1.0, %v2410_v53  ;;  %2413 = vpow2.f32 %v2281_v4 }
 0x522   :  { %v1880_v12 = vadd.f32 1.0, %v2412_v21 }
 0x523   :  { %2415 = vrcp.f32 %v1879_v9  ;;  %v1893_v36 = vand.u32 2147483648, %v1879_v9  ;;  %v1891_v22 = vand.u32 2147483647, %v1879_v9  ;;  %vm1887_vm10 = vweird.f32 %v1879_v9 }
 0x524   :  { %2417 = vrcp.f32 %v1880_v12  ;;  %v1908_v55 = vand.u32 2147483648, %v1880_v12  ;;  %v1906_v24 = vand.u32 2147483647, %v1880_v12  ;;  %vm1902_vm11 = vweird.f32 %v1880_v12 }
 0x525   :  { %v1894_v29 = vor.u32 1.1754944e-38, %v1893_v36  ;;  %vm1892_vm14 = vcmp.eq.f32.partialorder %v1891_v22, 8.507059e+37 }
 0x526   :  { %v1909_v7 = vor.u32 1.1754944e-38, %v1908_v55  ;;  %vm1907_vm15 = vcmp.eq.f32.partialorder %v1906_v24, 8.507059e+37 }
 0x527   :  { %v2414_v13 = vpop.eup %2413 }
 0x528   :  { %v1881_v48 = vadd.f32 1.0, %v2414_v13 }
 0x529   :  { %v2416_v34 = vpop.eup %2415 }
 0x52a   :  { %v2418_v1 = vpop.eup %2417  ;;  %v1883_v43 = vmul.f32 %v2416_v34, %v1879_v9  ;;  %2419 = vrcp.f32 %v1881_v48  ;;  %vm1888_vm8 = vweird.f32 %v2416_v34  ;;  %v1923_v32 = vand.u32 2147483648, %v1881_v48 }
 0x52b   :  { %v1898_v46 = vmul.f32 %v2418_v1, %v1880_v12  ;;  %2421 = vtanh.f32 %v1869_v60  ;;  %vm1903_vm9 = vweird.f32 %v2418_v1  ;;  %vm1889_vm12 = vmor %vm1887_vm10, %vm1888_vm8  ;;  %vm1917_vm1 = vweird.f32 %v1881_v48 }
 0x52c   :  { %v1884_v35 = vsub.f32 1.0, %v1883_v43  ;;  %vm1904_vm13 = vmor %vm1902_vm11, %vm1903_vm9  ;;  %v1921_v28 = vand.u32 2147483647, %v1881_v48  ;;  %v1924_v20 = vor.u32 1.1754944e-38, %v1923_v32 }
 0x52d   :  { %v1899_v50 = vsub.f32 1.0, %v1898_v46 }
 0x52e   :  { %v1885_v23 = vmul.f32 %v2416_v34, %v1884_v35  ;;  %vm1922_vm3 = vcmp.eq.f32.partialorder %v1921_v28, 8.507059e+37 }
 0x52f   :  { %v1900_v25 = vmul.f32 %v2418_v1, %v1899_v50 }
 0x530   :  { %v2420_v47 = vpop.eup %2419  ;;  %v1886_v62 = vadd.f32 %v2416_v34, %v1885_v23 }
 0x531   :  { %v1913_v59 = vmul.f32 %v2420_v47, %v1881_v48  ;;  %v1901_v31 = vadd.f32 %v2418_v1, %v1900_v25  ;;  %v2422_v8 = vpop.eup %2421  ;;  %vm1918_vm0 = vweird.f32 %v2420_v47 }
 0x532   :  { %v1890_v63 = vsel %vm1889_vm12, %v2416_v34, %v1886_v62  ;;  %vm1919_vm2 = vmor %vm1917_vm1, %vm1918_vm0 }
 0x533   :  { %v1914_v26 = vsub.f32 1.0, %v1913_v59  ;;  %v1895_v2 = vsel %vm1892_vm14, %v1894_v29, %v1890_v63  ;;  %v1905_v52 = vsel %vm1904_vm13, %v2418_v1, %v1901_v31 }
 0x534   :  { %v1910_v56 = vsel %vm1907_vm15, %v1909_v7, %v1905_v52  ;;  %v1929_v37 = vmul.f32 %v2422_v8, %v1895_v2 }
 0x535   :  { %v1915_v61 = vmul.f32 %v2420_v47, %v1914_v26  ;;  %v1928_v38 = vmul.f32 %v1910_v56, %v3807_v57  ;;  %v3938_v57 = vld [vmem:[#allocation41_spill] sm:$0xff] }
 0x537   :  { %v3842_v15 = vadd.f32 %v1929_v37, %v1928_v38  ;;  %v1916_v39 = vadd.f32 %v2420_v47, %v1915_v61 }
 0x539   :  { %2423 = vtanh.f32 %v3842_v15  ;;  %v1920_v58 = vsel %vm1919_vm2, %v2420_v47, %v1916_v39 }
 0x53a   :  { %v1925_v3 = vsel %vm1922_vm3, %v1924_v20, %v1920_v58 }
 0x53f   :  { %v2424_v10 = vpop.eup %2423 }
 0x540   :  { %v1932_v19 = vmul.f32 %v2424_v10, %v1925_v3 }
 0x542   :  { %2022 = vmatmul.f32.vlgmr.msrb.gmra.mxu0 %v1932_v19  ;;  %2042 = vmatmul.f32.vlgmr.msrb.gmra.mxu1 %v1932_v19 }
 0x543   :  { %2062 = vmatmul.f32.vlgmr.msrb.gmra.mxu2 %v1932_v19  ;;  %2082 = vmatmul.f32.vlgmr.msra.gmra.mxu3 %v1932_v19 }
 0x54a   :  { %2199 = vmatmul.f32.vlgmr.msra.gmra.mxu0 %v3938_v57 }
 0x552   :  { %2202 = vmatmul.f32.gmra.mxu0 %v3939_v51 }
 0x55a   :  { %2205 = vmatmul.f32.gmra.mxu0 %v3442_v41  ;;  %v3856_v41 = vld [vmem:[%s3881_s6] ss:$0 sm:$0xff]  ;;  %s2629_s6 = smov [#allocation15]  }
 0x55b   :  { %s2236_s8 = sshll.u32 %s2629_s6, 4  ;;  %s2237_s8 = int_to_ptr.vmem [resolvable:$true] %s2236_s8 }
 0x562   :  { %2208 = vmatmul.f32.gmra.mxu0 %v3509_v42 }
 0x56a   :  { %2211 = vmatmul.f32.gmra.mxu0 %v3586_v17  ;;  %v3942_v17 = vld [vmem:[#allocation40_spill] sm:$0xff] }
 0x572   :  { %2214 = vmatmul.f32.gmra.mxu0 %v3826_v33 }
 0x57a   :  { %2217 = vmatmul.f32.gmra.mxu0 %v1932_v19 }
 0x5bf   :  { %v2023_v45 = vpop.f32.mrf.mxu0  ;;  %v2043_v40 = vpop.f32.mrf.mxu1 }
 0x5c0   :  { %v2086_v27 = vadd.f32 %v2023_v45, %v3940_v44  ;;  %v2087_v16 = vadd.f32 %v2043_v40, %v3941_v0 }
 0x5c2   :  { %v2282_v30 = vmul.f32 -1.442695, %v2086_v27  ;;  %v2283_v4 = vmul.f32 -1.442695, %v2087_v16 }
 0x5c4   :  { %2425 = vpow2.f32 %v2282_v30 }
 0x5c5   :  { %2427 = vpow2.f32 %v2283_v4 }
 0x5c6   :  { %v2063_v42 = vpop.f32.mrf.mxu2  ;;  %v2083_v54 = vpop.f32.mrf.mxu3 }
 0x5c7   :  { %v2088_v5 = vadd.f32 %v2063_v42, %v3942_v17  ;;  %v2200_v33 = vpop.f32.mrf.mxu0  ;;  %v2089_v60 = vadd.f32 %v2083_v54, %v3943_v11 }
 0x5c8   :  { %v2201_v53 = vadd.f32 %v3856_v41, %v2200_v33 }
 0x5c9   :  { %v2284_v21 = vmul.f32 -1.442695, %v2088_v5 }
 0x5ca   :  { %v2426_v9 = vpop.eup %2425  ;;  %2224 = vst [vmem:[#allocation15] sm:$0xff] %v2201_v53 }
 0x5cb   :  { %v2428_v12 = vpop.eup %2427  ;;  %v2099_v18 = vadd.f32 1.0, %v2426_v9  ;;  %2429 = vpow2.f32 %v2284_v21 }
 0x5cc   :  { %v2100_v6 = vadd.f32 1.0, %v2428_v12 }
 0x5cd   :  { %2431 = vrcp.f32 %v2099_v18  ;;  %v2111_v36 = vand.u32 2147483647, %v2099_v18  ;;  %v2113_v55 = vand.u32 2147483648, %v2099_v18  ;;  %vm2107_vm6 = vweird.f32 %v2099_v18 }
 0x5ce   :  { %2433 = vrcp.f32 %v2100_v6  ;;  %v2128_v22 = vand.u32 2147483648, %v2100_v6  ;;  %v2126_v62 = vand.u32 2147483647, %v2100_v6  ;;  %vm2122_vm7 = vweird.f32 %v2100_v6 }
 0x5cf   :  { %v2203_v49 = vpop.f32.mrf.mxu0  ;;  %v2114_v31 = vor.u32 1.1754944e-38, %v2113_v55  ;;  %vm2112_vm9 = vcmp.eq.f32.partialorder %v2111_v36, 8.507059e+37 }
 0x5d0   :  { %v2204_v13 = vadd.f32 %v3856_v41, %v2203_v49  ;;  %v2129_v8 = vor.u32 1.1754944e-38, %v2128_v22  ;;  %vm2127_vm11 = vcmp.eq.f32.partialorder %v2126_v62, 8.507059e+37 }
 0x5d1   :  { %v2430_v14 = vpop.eup %2429 }
 0x5d2   :  { %v2101_v48 = vadd.f32 1.0, %v2430_v14  ;;  %2225 = vst [vmem:[#allocation15 + $0x8] sm:$0xff] %v2204_v13 }
 0x5d3   :  { %v2432_v34 = vpop.eup %2431 }
 0x5d4   :  { %v2434_v1 = vpop.eup %2433  ;;  %v2103_v43 = vmul.f32 %v2432_v34, %v2099_v18  ;;  %2435 = vrcp.f32 %v2101_v48  ;;  %vm2108_vm4 = vweird.f32 %v2432_v34  ;;  %v2143_v3 = vand.u32 2147483648, %v2101_v48 }
 0x5d5   :  { %v2118_v46 = vmul.f32 %v2434_v1, %v2100_v6  ;;  %2437 = vtanh.f32 %v2089_v60  ;;  %vm2123_vm5 = vweird.f32 %v2434_v1  ;;  %vm2109_vm8 = vmor %vm2107_vm6, %vm2108_vm4  ;;  %vm2137_vm13 = vweird.f32 %v2101_v48 }
 0x5d6   :  { %v2104_v35 = vsub.f32 1.0, %v2103_v43  ;;  %vm2124_vm10 = vmor %vm2122_vm7, %vm2123_vm5  ;;  %v2141_v19 = vand.u32 2147483647, %v2101_v48  ;;  %v2144_v45 = vor.u32 1.1754944e-38, %v2143_v3 }
 0x5d7   :  { %v2119_v50 = vsub.f32 1.0, %v2118_v46  ;;  %v2206_v23 = vpop.f32.mrf.mxu0 }
 0x5d8   :  { %v2105_v25 = vmul.f32 %v2432_v34, %v2104_v35  ;;  %v2207_v24 = vadd.f32 %v3856_v41, %v2206_v23  ;;  %vm2142_vm15 = vcmp.eq.f32.partialorder %v2141_v19, 8.507059e+37 }
 0x5d9   :  { %v2120_v47 = vmul.f32 %v2434_v1, %v2119_v50 }
 0x5da   :  { %v2436_v59 = vpop.eup %2435  ;;  %v2106_v29 = vadd.f32 %v2432_v34, %v2105_v25  ;;  %2226 = vst [vmem:[#allocation15 + $0x10] sm:$0xff] %v2207_v24 }
 0x5db   :  { %v2121_v7 = vadd.f32 %v2434_v1, %v2120_v47  ;;  %v2133_v63 = vmul.f32 %v2436_v59, %v2101_v48  ;;  %v2438_v2 = vpop.eup %2437  ;;  %vm2138_vm12 = vweird.f32 %v2436_v59 }
 0x5dc   :  { %v2110_v26 = vsel %vm2109_vm8, %v2432_v34, %v2106_v29  ;;  %vm2139_vm14 = vmor %vm2137_vm13, %vm2138_vm12 }
 0x5dd   :  { %v2115_v52 = vsel %vm2112_vm9, %v2114_v31, %v2110_v26  ;;  %v2125_v56 = vsel %vm2124_vm10, %v2434_v1, %v2121_v7  ;;  %v2134_v37 = vsub.f32 1.0, %v2133_v63 }
 0x5de   :  { %v2149_v61 = vmul.f32 %v2438_v2, %v2115_v52  ;;  %v2130_v38 = vsel %vm2127_vm11, %v2129_v8, %v2125_v56 }
 0x5df   :  { %v2209_v39 = vpop.f32.mrf.mxu0  ;;  %v2135_v32 = vmul.f32 %v2436_v59, %v2134_v37  ;;  %v2148_v28 = vmul.f32 %v2130_v38, %v3842_v15 }
 0x5e0   :  { %v2210_v58 = vadd.f32 %v3856_v41, %v2209_v39 }
 0x5e1   :  { %v2150_v20 = vadd.f32 %v2149_v61, %v2148_v28  ;;  %v2136_v10 = vadd.f32 %v2436_v59, %v2135_v32 }
 0x5e2   :  { %2227 = vst [vmem:[#allocation15 + $0x18] sm:$0xff] %v2210_v58 }
 0x5e3   :  { %2439 = vtanh.f32 %v2150_v20  ;;  %v2140_v57 = vsel %vm2139_vm14, %v2436_v59, %v2136_v10 }
 0x5e4   :  { %v2145_v27 = vsel %vm2142_vm15, %v2144_v45, %v2140_v57 }
 0x5e7   :  { %v2212_v51 = vpop.f32.mrf.mxu0 }
 0x5e8   :  { %v2213_v40 = vadd.f32 %v3856_v41, %v2212_v51 }
 0x5e9   :  { %v2440_v44 = vpop.eup %2439 }
 0x5ea   :  { %2228 = vst [vmem:[#allocation15 + $0x20] sm:$0xff] %v2213_v40  ;;  %v2152_v15 = vmul.f32 %v2440_v44, %v2145_v27 }
 0x5ec   :  { %2220 = vmatmul.f32.gmra.mxu0 %v2152_v15 }
 0x5ef   :  { %v2215_v0 = vpop.f32.mrf.mxu0 }
 0x5f0   :  { %v2216_v16 = vadd.f32 %v3856_v41, %v2215_v0 }
 0x5f2   :  { %2229 = vst [vmem:[#allocation15 + $0x28] sm:$0xff] %v2216_v16 }
 0x5f7   :  { %v2218_v30 = vpop.f32.mrf.mxu0 }
 0x5f8   :  { %v2219_v4 = vadd.f32 %v3856_v41, %v2218_v30 }
 0x5fa   :  { %2230 = vst [vmem:[#allocation15 + $0x30] sm:$0xff] %v2219_v4 }
 0x669   :  { %v2221_v42 = vpop.f32.mrf.mxu0 }
 0x66a   :  { %v2222_v17 = vadd.f32 %v3856_v41, %v2221_v42 }
 0x66c   :  { %2231 = vst [vmem:[#allocation15 + $0x38] sm:$0xff] %v2222_v17 }
 0x66d   :  { %2244 = dma.vmem_to_hbm [thread:$0]  %s2237_s8, 1024, %s2239_s11, [#allocation6], %s2624_s19, %s2624_s19, %s2625_s20  }
 0x66e   :  { %2617 = dma.done.wait [#allocation6], 1024  }
 0x66f   :  { %2618 = vsyncadd [#allocation6], 4294966272 }
 0x670   :  { %2249 = vsyncpa [#allocation5], 1 }
 0x671   :  { %2250 = vsyncpa [#allocation8], 1 }
 0x672   :  { %2251 = vsyncpa [#allocation11], 1 }
 0x673   :  { %2252 = vsyncpa [#allocation14], 1 }
 0x674   :  { %2253 = vsyncpa [#allocation6], 1 }

</bundles_post_ra>
